<compile_context>
chip_gen: v6e
topology: v6e:2x2x1
jax: 0.10.0
libtpu: 0.0.40
codegen_flags: <defaults>
</compile_context>

<pallas_src>
import numpy as np
import jax
import jax.numpy as jnp
from jax import lax
from jax.experimental import pallas as pl
from jax.experimental.pallas import tpu as pltpu

# -------- synthetic config (stands in for `args` / `vocab`) --------
VOCAB       = 32   # vocab.size
DIM_EMB     = 16   # args.dim_emb
DIM_H       = 32   # args.dim_h
NLAYERS     = 1    # args.nlayers
OUTPUT_SIZE = 2    # args.output_size
SEQ         = 8
BATCH       = 2


def _vmem_spec():
    # Whole (tiny) arrays resident in VMEM, no grid tiling needed.
    return pl.BlockSpec(memory_space=pltpu.MemorySpace.VMEM)


# ---------------------------- fused Pallas kernel ----------------------------

def _classifier_kernel(tok_ref, embed_ref,
                       fwih_ref, fwhh_ref, fb_ref,
                       bwih_ref, bwhh_ref, bb_ref,
                       how_ref, hob_ref,
                       out_ref):
    # Static shapes
    V = embed_ref.shape[0]
    H = fwhh_ref.shape[0]
    B = out_ref.shape[0]
    TB = tok_ref.shape[0]
    T = TB // B

    # --- embedding lookup as one-hot MXU matmul (no data-dependent indexing) ---
    tok = tok_ref[...]                                            # (T*B, 1) int32
    iota_v = lax.broadcasted_iota(jnp.int32, (TB, V), 1)
    onehot = (tok == iota_v).astype(jnp.float32)                  # (T*B, V)
    embds = jnp.dot(onehot, embed_ref[...],
                    preferred_element_type=jnp.float32)           # (T*B, E)

    # --- hoisted input projections: one big matmul per direction ---
    gx_f = jnp.dot(embds, fwih_ref[...],
                   preferred_element_type=jnp.float32) + fb_ref[...]   # (T*B, 4H)
    gx_b = jnp.dot(embds, bwih_ref[...],
                   preferred_element_type=jnp.float32) + bb_ref[...]   # (T*B, 4H)

    whh_f = fwhh_ref[...]
    whh_b = bwhh_ref[...]

    def cell(gx_t, h, c, whh):
        # gx_t: (B, 4H) precomputed x@W_ih + b; gates ordered (i, f, o, g)
        gates = gx_t + jnp.dot(h, whh, preferred_element_type=jnp.float32)
        sig = jax.nn.sigmoid(gates[:, :3 * H])        # one wide EUP op for i,f,o
        i = sig[:, 0 * H:1 * H]
        f = sig[:, 1 * H:2 * H]
        o = sig[:, 2 * H:3 * H]
        g = jnp.tanh(gates[:, 3 * H:4 * H])
        c = f * c + i * g
        h = o * jnp.tanh(c)
        return h, c

    h_f = jnp.zeros((B, H), jnp.float32)
    c_f = jnp.zeros((B, H), jnp.float32)
    h_b = jnp.zeros((B, H), jnp.float32)
    c_b = jnp.zeros((B, H), jnp.float32)

    # Fully unrolled time loop (T is small & static); forward and backward
    # directions share the same VMEM-resident precomputed projections.
    for t in range(T):
        h_f, c_f = cell(gx_f[t * B:(t + 1) * B, :], h_f, c_f, whh_f)
        tb = T - 1 - t
        h_b, c_b = cell(gx_b[tb * B:(tb + 1) * B, :], h_b, c_b, whh_b)

    # --- h2out + softmax(dim=1) ---
    h_cat = jnp.concatenate([h_f, h_b], axis=1)                   # (B, 2H)
    logits = jnp.dot(h_cat, how_ref[...],
                     preferred_element_type=jnp.float32) + hob_ref[...]  # (B, O)
    m = jnp.max(logits, axis=1, keepdims=True)
    e = jnp.exp(logits - m)
    out_ref[...] = (e / jnp.sum(e, axis=1, keepdims=True)).astype(out_ref.dtype)


# ----------------------------- wrapper -----------------------------

def _reorder_gates(w):
    """Permute PyTorch gate columns (i, f, g, o) -> (i, f, o, g)."""
    H = DIM_H
    return jnp.concatenate([w[..., :2 * H], w[..., 3 * H:4 * H],
                            w[..., 2 * H:3 * H]], axis=-1)


def classifier_forward(params, tokens):
    """tokens: int32 [T, B]. Returns softmax probabilities [B, output_size]."""
    T, B = tokens.shape
    tok_flat = tokens.reshape(T * B, 1).astype(jnp.int32)
    args = (
        tok_flat,
        params['embed'],
        _reorder_gates(params['E_fwd_wih']),
        _reorder_gates(params['E_fwd_whh']),
        _reorder_gates(params['E_fwd_b']),
        _reorder_gates(params['E_bwd_wih']),
        _reorder_gates(params['E_bwd_whh']),
        _reorder_gates(params['E_bwd_b']),
        params['h2out_w'],
        params['h2out_b'],
    )
    return pl.pallas_call(
        _classifier_kernel,
        out_shape=jax.ShapeDtypeStruct((B, OUTPUT_SIZE), jnp.float32),
        in_specs=[_vmem_spec()] * len(args),
        out_specs=_vmem_spec(),
    )(*args)


# ----------------------- parameters (PyTorch-style init) -----------------------

def init_params(key):
    ks = jax.random.split(key, 12)
    u = lambda k, shape, r: jax.random.uniform(k, shape, jnp.float32, -r, r)
    H, E, V, O = DIM_H, DIM_EMB, VOCAB, OUTPUT_SIZE
    r = 1.0 / np.sqrt(H)
    r2 = 1.0 / np.sqrt(2 * H)
    p = {}
    p['embed'] = u(ks[0], (V, E), 0.1)              # embed.weight.uniform_(-0.1, 0.1)
    # encoder bidirectional LSTM (nlayers=1): forward + backward direction
    # gate order (i, f, g, o); bias = b_ih + b_hh folded together
    p['E_fwd_wih'] = u(ks[1], (E, 4 * H), r)
    p['E_fwd_whh'] = u(ks[2], (H, 4 * H), r)
    p['E_fwd_b']   = u(ks[3], (1, 4 * H), r)
    p['E_bwd_wih'] = u(ks[4], (E, 4 * H), r)
    p['E_bwd_whh'] = u(ks[5], (H, 4 * H), r)
    p['E_bwd_b']   = u(ks[6], (1, 4 * H), r)
    # h2out: Linear(2H, output_size)
    p['h2out_w'] = u(ks[7], (2 * H, O), r2)
    p['h2out_b'] = u(ks[8], (1, O), r2)
    return p


# ----------------------- pure-JAX reference (check) -----------------------

def _lstm_ref(x, wih_t, whh_t, b):
    T, B, _ = x.shape
    H = whh_t.shape[0]

    def step(carry, x_t):
        h, c = carry
        gates = x_t @ wih_t + h @ whh_t + b
        i = jax.nn.sigmoid(gates[:, :H])
        f = jax.nn.sigmoid(gates[:, H:2 * H])
        g = jnp.tanh(gates[:, 2 * H:3 * H])
        o = jax.nn.sigmoid(gates[:, 3 * H:])
        c = f * c + i * g
        h = o * jnp.tanh(c)
        return (h, c), h

    (h, _), _ = lax.scan(step, (jnp.zeros((B, H), jnp.float32),
                                jnp.zeros((B, H), jnp.float32)), x)
    return h


def forward_ref(params, tokens):
    embds = jnp.take(params['embed'], tokens, axis=0)              # (T, B, E)
    h_fwd = _lstm_ref(embds, params['E_fwd_wih'], params['E_fwd_whh'], params['E_fwd_b'])
    h_bwd = _lstm_ref(embds[::-1], params['E_bwd_wih'], params['E_bwd_whh'], params['E_bwd_b'])
    h = jnp.concatenate([h_fwd, h_bwd], axis=1)                    # cat([h[-2], h[-1]], 1)
    logits = h @ params['h2out_w'] + params['h2out_b']
    return jax.nn.softmax(logits, axis=1)


if __name__ == "__main__":
    key = jax.random.PRNGKey(0)
    pkey, tkey = jax.random.split(key)
    params = init_params(pkey)
    tokens = jax.random.randint(tkey, (SEQ, BATCH), 0, VOCAB, dtype=jnp.int32)

    out = classifier_forward(params, tokens)
    jax.block_until_ready(out)

    assert out.shape == (BATCH, OUTPUT_SIZE) and out.dtype == jnp.float32

    out_ref = forward_ref(params, tokens)
    np.testing.assert_allclose(np.asarray(out), np.asarray(out_ref), rtol=2e-2, atol=2e-2)
    np.testing.assert_allclose(np.asarray(out).sum(axis=1), np.ones(BATCH),
                               rtol=1e-4, atol=1e-4)

    print("KERNEL_OK")
</pallas_src>

<mosaic_0001>
module attributes {stable_mosaic.version = 11 : i64} {
  func.func @_classifier_kernel(%arg0: memref<16x1xi32, #tpu.memory_space<vmem>>, %arg1: memref<32x16xf32, #tpu.memory_space<vmem>>, %arg2: memref<16x128xf32, #tpu.memory_space<vmem>>, %arg3: memref<32x128xf32, #tpu.memory_space<vmem>>, %arg4: memref<1x128xf32, #tpu.memory_space<vmem>>, %arg5: memref<16x128xf32, #tpu.memory_space<vmem>>, %arg6: memref<32x128xf32, #tpu.memory_space<vmem>>, %arg7: memref<1x128xf32, #tpu.memory_space<vmem>>, %arg8: memref<64x2xf32, #tpu.memory_space<vmem>>, %arg9: memref<1x2xf32, #tpu.memory_space<vmem>>, %arg10: memref<2x2xf32, #tpu.memory_space<vmem>>) attributes {dimension_semantics = [], scalar_prefetch = 0 : i64, scratch_operands = 0 : i64, tpu.core_type = #tpu.core_type<tc>} {
    %c0 = arith.constant 0 : index
    %c0_0 = arith.constant 0 : index
    %0 = vector.load %arg0[%c0, %c0_0] : memref<16x1xi32, #tpu.memory_space<vmem>>, vector<16x1xi32>
    %1 = tpu.iota {dimensions = array<i32: 1>} : vector<16x32xi32>
    %2 = vector.broadcast %0 : vector<16x1xi32> to vector<16x32xi32>
    %3 = arith.cmpi eq, %2, %1 : vector<16x32xi32>
    %4 = arith.extui %3 : vector<16x32xi1> to vector<16x32xi32>
    %5 = arith.sitofp %4 : vector<16x32xi32> to vector<16x32xf32>
    %c0_1 = arith.constant 0 : index
    %c0_2 = arith.constant 0 : index
    %6 = vector.load %arg1[%c0_1, %c0_2] : memref<32x16xf32, #tpu.memory_space<vmem>>, vector<32x16xf32>
    %cst = arith.constant dense<0.000000e+00> : vector<16x16xf32>
    %7 = tpu.matmul %5, %6, %cst {dimension_numbers = #tpu.dot_dimension_numbers<[1], [0], [0], [1], [0, 0, 1, 1], [], []>} : vector<16x32xf32>, vector<32x16xf32>, vector<16x16xf32> -> vector<16x16xf32>
    %c0_3 = arith.constant 0 : index
    %c0_4 = arith.constant 0 : index
    %8 = vector.load %arg2[%c0_3, %c0_4] : memref<16x128xf32, #tpu.memory_space<vmem>>, vector<16x128xf32>
    %cst_5 = arith.constant dense<0.000000e+00> : vector<16x128xf32>
    %9 = tpu.matmul %7, %8, %cst_5 {dimension_numbers = #tpu.dot_dimension_numbers<[1], [0], [0], [1], [0, 0, 1, 1], [], []>} : vector<16x16xf32>, vector<16x128xf32>, vector<16x128xf32> -> vector<16x128xf32>
    %c0_6 = arith.constant 0 : index
    %c0_7 = arith.constant 0 : index
    %10 = vector.load %arg4[%c0_6, %c0_7] : memref<1x128xf32, #tpu.memory_space<vmem>>, vector<1x128xf32>
    %11 = vector.broadcast %10 : vector<1x128xf32> to vector<16x128xf32>
    %12 = arith.addf %9, %11 : vector<16x128xf32>
    %c0_8 = arith.constant 0 : index
    %c0_9 = arith.constant 0 : index
    %13 = vector.load %arg5[%c0_8, %c0_9] : memref<16x128xf32, #tpu.memory_space<vmem>>, vector<16x128xf32>
    %cst_10 = arith.constant dense<0.000000e+00> : vector<16x128xf32>
    %14 = tpu.matmul %7, %13, %cst_10 {dimension_numbers = #tpu.dot_dimension_numbers<[1], [0], [0], [1], [0, 0, 1, 1], [], []>} : vector<16x16xf32>, vector<16x128xf32>, vector<16x128xf32> -> vector<16x128xf32>
    %c0_11 = arith.constant 0 : index
    %c0_12 = arith.constant 0 : index
    %15 = vector.load %arg7[%c0_11, %c0_12] : memref<1x128xf32, #tpu.memory_space<vmem>>, vector<1x128xf32>
    %16 = vector.broadcast %15 : vector<1x128xf32> to vector<16x128xf32>
    %17 = arith.addf %14, %16 : vector<16x128xf32>
    %c0_13 = arith.constant 0 : index
    %c0_14 = arith.constant 0 : index
    %18 = vector.load %arg3[%c0_13, %c0_14] : memref<32x128xf32, #tpu.memory_space<vmem>>, vector<32x128xf32>
    %c0_15 = arith.constant 0 : index
    %c0_16 = arith.constant 0 : index
    %19 = vector.load %arg6[%c0_15, %c0_16] : memref<32x128xf32, #tpu.memory_space<vmem>>, vector<32x128xf32>
    %cst_17 = arith.constant 0.000000e+00 : f32
    %20 = vector.broadcast %cst_17 : f32 to vector<2x32xf32>
    %cst_18 = arith.constant 0.000000e+00 : f32
    %21 = vector.broadcast %cst_18 : f32 to vector<2x32xf32>
    %cst_19 = arith.constant 0.000000e+00 : f32
    %22 = vector.broadcast %cst_19 : f32 to vector<2x32xf32>
    %cst_20 = arith.constant 0.000000e+00 : f32
    %23 = vector.broadcast %cst_20 : f32 to vector<2x32xf32>
    %24 = vector.extract_strided_slice %12 {offsets = [0, 0], sizes = [2, 128], strides = [1, 1]} : vector<16x128xf32> to vector<2x128xf32>
    %cst_21 = arith.constant dense<0.000000e+00> : vector<2x128xf32>
    %25 = tpu.matmul %20, %18, %cst_21 {dimension_numbers = #tpu.dot_dimension_numbers<[1], [0], [0], [1], [0, 0, 1, 1], [], []>} : vector<2x32xf32>, vector<32x128xf32>, vector<2x128xf32> -> vector<2x128xf32>
    %26 = arith.addf %24, %25 : vector<2x128xf32>
    %27 = vector.extract_strided_slice %26 {offsets = [0, 0], sizes = [2, 96], strides = [1, 1]} : vector<2x128xf32> to vector<2x96xf32>
    %28 = arith.negf %27 : vector<2x96xf32>
    %29 = math.exp %28 : vector<2x96xf32>
    %cst_22 = arith.constant 1.000000e+00 : f32
    %30 = vector.broadcast %cst_22 : f32 to vector<2x96xf32>
    %31 = arith.addf %30, %29 : vector<2x96xf32>
    %32 = arith.divf %30, %31 : vector<2x96xf32>
    %33 = vector.extract_strided_slice %32 {offsets = [0, 0], sizes = [2, 32], strides = [1, 1]} : vector<2x96xf32> to vector<2x32xf32>
    %34 = vector.extract_strided_slice %32 {offsets = [0, 32], sizes = [2, 32], strides = [1, 1]} : vector<2x96xf32> to vector<2x32xf32>
    %35 = vector.extract_strided_slice %32 {offsets = [0, 64], sizes = [2, 32], strides = [1, 1]} : vector<2x96xf32> to vector<2x32xf32>
    %36 = vector.extract_strided_slice %26 {offsets = [0, 96], sizes = [2, 32], strides = [1, 1]} : vector<2x128xf32> to vector<2x32xf32>
    %37 = math.tanh %36 : vector<2x32xf32>
    %38 = arith.mulf %34, %21 : vector<2x32xf32>
    %39 = arith.mulf %33, %37 : vector<2x32xf32>
    %40 = arith.addf %38, %39 : vector<2x32xf32>
    %41 = math.tanh %40 : vector<2x32xf32>
    %42 = arith.mulf %35, %41 : vector<2x32xf32>
    %43 = vector.extract_strided_slice %17 {offsets = [14, 0], sizes = [2, 128], strides = [1, 1]} : vector<16x128xf32> to vector<2x128xf32>
    %cst_23 = arith.constant dense<0.000000e+00> : vector<2x128xf32>
    %44 = tpu.matmul %22, %19, %cst_23 {dimension_numbers = #tpu.dot_dimension_numbers<[1], [0], [0], [1], [0, 0, 1, 1], [], []>} : vector<2x32xf32>, vector<32x128xf32>, vector<2x128xf32> -> vector<2x128xf32>
    %45 = arith.addf %43, %44 : vector<2x128xf32>
    %46 = vector.extract_strided_slice %45 {offsets = [0, 0], sizes = [2, 96], strides = [1, 1]} : vector<2x128xf32> to vector<2x96xf32>
    %47 = arith.negf %46 : vector<2x96xf32>
    %48 = math.exp %47 : vector<2x96xf32>
    %cst_24 = arith.constant 1.000000e+00 : f32
    %49 = vector.broadcast %cst_24 : f32 to vector<2x96xf32>
    %50 = arith.addf %49, %48 : vector<2x96xf32>
    %51 = arith.divf %49, %50 : vector<2x96xf32>
    %52 = vector.extract_strided_slice %51 {offsets = [0, 0], sizes = [2, 32], strides = [1, 1]} : vector<2x96xf32> to vector<2x32xf32>
    %53 = vector.extract_strided_slice %51 {offsets = [0, 32], sizes = [2, 32], strides = [1, 1]} : vector<2x96xf32> to vector<2x32xf32>
    %54 = vector.extract_strided_slice %51 {offsets = [0, 64], sizes = [2, 32], strides = [1, 1]} : vector<2x96xf32> to vector<2x32xf32>
    %55 = vector.extract_strided_slice %45 {offsets = [0, 96], sizes = [2, 32], strides = [1, 1]} : vector<2x128xf32> to vector<2x32xf32>
    %56 = math.tanh %55 : vector<2x32xf32>
    %57 = arith.mulf %53, %23 : vector<2x32xf32>
    %58 = arith.mulf %52, %56 : vector<2x32xf32>
    %59 = arith.addf %57, %58 : vector<2x32xf32>
    %60 = math.tanh %59 : vector<2x32xf32>
    %61 = arith.mulf %54, %60 : vector<2x32xf32>
    %62 = vector.extract_strided_slice %12 {offsets = [2, 0], sizes = [2, 128], strides = [1, 1]} : vector<16x128xf32> to vector<2x128xf32>
    %cst_25 = arith.constant dense<0.000000e+00> : vector<2x128xf32>
    %63 = tpu.matmul %42, %18, %cst_25 {dimension_numbers = #tpu.dot_dimension_numbers<[1], [0], [0], [1], [0, 0, 1, 1], [], []>} : vector<2x32xf32>, vector<32x128xf32>, vector<2x128xf32> -> vector<2x128xf32>
    %64 = arith.addf %62, %63 : vector<2x128xf32>
    %65 = vector.extract_strided_slice %64 {offsets = [0, 0], sizes = [2, 96], strides = [1, 1]} : vector<2x128xf32> to vector<2x96xf32>
    %66 = arith.negf %65 : vector<2x96xf32>
    %67 = math.exp %66 : vector<2x96xf32>
    %cst_26 = arith.constant 1.000000e+00 : f32
    %68 = vector.broadcast %cst_26 : f32 to vector<2x96xf32>
    %69 = arith.addf %68, %67 : vector<2x96xf32>
    %70 = arith.divf %68, %69 : vector<2x96xf32>
    %71 = vector.extract_strided_slice %70 {offsets = [0, 0], sizes = [2, 32], strides = [1, 1]} : vector<2x96xf32> to vector<2x32xf32>
    %72 = vector.extract_strided_slice %70 {offsets = [0, 32], sizes = [2, 32], strides = [1, 1]} : vector<2x96xf32> to vector<2x32xf32>
    %73 = vector.extract_strided_slice %70 {offsets = [0, 64], sizes = [2, 32], strides = [1, 1]} : vector<2x96xf32> to vector<2x32xf32>
    %74 = vector.extract_strided_slice %64 {offsets = [0, 96], sizes = [2, 32], strides = [1, 1]} : vector<2x128xf32> to vector<2x32xf32>
    %75 = math.tanh %74 : vector<2x32xf32>
    %76 = arith.mulf %72, %40 : vector<2x32xf32>
    %77 = arith.mulf %71, %75 : vector<2x32xf32>
    %78 = arith.addf %76, %77 : vector<2x32xf32>
    %79 = math.tanh %78 : vector<2x32xf32>
    %80 = arith.mulf %73, %79 : vector<2x32xf32>
    %81 = vector.extract_strided_slice %17 {offsets = [12, 0], sizes = [2, 128], strides = [1, 1]} : vector<16x128xf32> to vector<2x128xf32>
    %cst_27 = arith.constant dense<0.000000e+00> : vector<2x128xf32>
    %82 = tpu.matmul %61, %19, %cst_27 {dimension_numbers = #tpu.dot_dimension_numbers<[1], [0], [0], [1], [0, 0, 1, 1], [], []>} : vector<2x32xf32>, vector<32x128xf32>, vector<2x128xf32> -> vector<2x128xf32>
    %83 = arith.addf %81, %82 : vector<2x128xf32>
    %84 = vector.extract_strided_slice %83 {offsets = [0, 0], sizes = [2, 96], strides = [1, 1]} : vector<2x128xf32> to vector<2x96xf32>
    %85 = arith.negf %84 : vector<2x96xf32>
    %86 = math.exp %85 : vector<2x96xf32>
    %cst_28 = arith.constant 1.000000e+00 : f32
    %87 = vector.broadcast %cst_28 : f32 to vector<2x96xf32>
    %88 = arith.addf %87, %86 : vector<2x96xf32>
    %89 = arith.divf %87, %88 : vector<2x96xf32>
    %90 = vector.extract_strided_slice %89 {offsets = [0, 0], sizes = [2, 32], strides = [1, 1]} : vector<2x96xf32> to vector<2x32xf32>
    %91 = vector.extract_strided_slice %89 {offsets = [0, 32], sizes = [2, 32], strides = [1, 1]} : vector<2x96xf32> to vector<2x32xf32>
    %92 = vector.extract_strided_slice %89 {offsets = [0, 64], sizes = [2, 32], strides = [1, 1]} : vector<2x96xf32> to vector<2x32xf32>
    %93 = vector.extract_strided_slice %83 {offsets = [0, 96], sizes = [2, 32], strides = [1, 1]} : vector<2x128xf32> to vector<2x32xf32>
    %94 = math.tanh %93 : vector<2x32xf32>
    %95 = arith.mulf %91, %59 : vector<2x32xf32>
    %96 = arith.mulf %90, %94 : vector<2x32xf32>
    %97 = arith.addf %95, %96 : vector<2x32xf32>
    %98 = math.tanh %97 : vector<2x32xf32>
    %99 = arith.mulf %92, %98 : vector<2x32xf32>
    %100 = vector.extract_strided_slice %12 {offsets = [4, 0], sizes = [2, 128], strides = [1, 1]} : vector<16x128xf32> to vector<2x128xf32>
    %cst_29 = arith.constant dense<0.000000e+00> : vector<2x128xf32>
    %101 = tpu.matmul %80, %18, %cst_29 {dimension_numbers = #tpu.dot_dimension_numbers<[1], [0], [0], [1], [0, 0, 1, 1], [], []>} : vector<2x32xf32>, vector<32x128xf32>, vector<2x128xf32> -> vector<2x128xf32>
    %102 = arith.addf %100, %101 : vector<2x128xf32>
    %103 = vector.extract_strided_slice %102 {offsets = [0, 0], sizes = [2, 96], strides = [1, 1]} : vector<2x128xf32> to vector<2x96xf32>
    %104 = arith.negf %103 : vector<2x96xf32>
    %105 = math.exp %104 : vector<2x96xf32>
    %cst_30 = arith.constant 1.000000e+00 : f32
    %106 = vector.broadcast %cst_30 : f32 to vector<2x96xf32>
    %107 = arith.addf %106, %105 : vector<2x96xf32>
    %108 = arith.divf %106, %107 : vector<2x96xf32>
    %109 = vector.extract_strided_slice %108 {offsets = [0, 0], sizes = [2, 32], strides = [1, 1]} : vector<2x96xf32> to vector<2x32xf32>
    %110 = vector.extract_strided_slice %108 {offsets = [0, 32], sizes = [2, 32], strides = [1, 1]} : vector<2x96xf32> to vector<2x32xf32>
    %111 = vector.extract_strided_slice %108 {offsets = [0, 64], sizes = [2, 32], strides = [1, 1]} : vector<2x96xf32> to vector<2x32xf32>
    %112 = vector.extract_strided_slice %102 {offsets = [0, 96], sizes = [2, 32], strides = [1, 1]} : vector<2x128xf32> to vector<2x32xf32>
    %113 = math.tanh %112 : vector<2x32xf32>
    %114 = arith.mulf %110, %78 : vector<2x32xf32>
    %115 = arith.mulf %109, %113 : vector<2x32xf32>
    %116 = arith.addf %114, %115 : vector<2x32xf32>
    %117 = math.tanh %116 : vector<2x32xf32>
    %118 = arith.mulf %111, %117 : vector<2x32xf32>
    %119 = vector.extract_strided_slice %17 {offsets = [10, 0], sizes = [2, 128], strides = [1, 1]} : vector<16x128xf32> to vector<2x128xf32>
    %cst_31 = arith.constant dense<0.000000e+00> : vector<2x128xf32>
    %120 = tpu.matmul %99, %19, %cst_31 {dimension_numbers = #tpu.dot_dimension_numbers<[1], [0], [0], [1], [0, 0, 1, 1], [], []>} : vector<2x32xf32>, vector<32x128xf32>, vector<2x128xf32> -> vector<2x128xf32>
    %121 = arith.addf %119, %120 : vector<2x128xf32>
    %122 = vector.extract_strided_slice %121 {offsets = [0, 0], sizes = [2, 96], strides = [1, 1]} : vector<2x128xf32> to vector<2x96xf32>
    %123 = arith.negf %122 : vector<2x96xf32>
    %124 = math.exp %123 : vector<2x96xf32>
    %cst_32 = arith.constant 1.000000e+00 : f32
    %125 = vector.broadcast %cst_32 : f32 to vector<2x96xf32>
    %126 = arith.addf %125, %124 : vector<2x96xf32>
    %127 = arith.divf %125, %126 : vector<2x96xf32>
    %128 = vector.extract_strided_slice %127 {offsets = [0, 0], sizes = [2, 32], strides = [1, 1]} : vector<2x96xf32> to vector<2x32xf32>
    %129 = vector.extract_strided_slice %127 {offsets = [0, 32], sizes = [2, 32], strides = [1, 1]} : vector<2x96xf32> to vector<2x32xf32>
    %130 = vector.extract_strided_slice %127 {offsets = [0, 64], sizes = [2, 32], strides = [1, 1]} : vector<2x96xf32> to vector<2x32xf32>
    %131 = vector.extract_strided_slice %121 {offsets = [0, 96], sizes = [2, 32], strides = [1, 1]} : vector<2x128xf32> to vector<2x32xf32>
    %132 = math.tanh %131 : vector<2x32xf32>
    %133 = arith.mulf %129, %97 : vector<2x32xf32>
    %134 = arith.mulf %128, %132 : vector<2x32xf32>
    %135 = arith.addf %133, %134 : vector<2x32xf32>
    %136 = math.tanh %135 : vector<2x32xf32>
    %137 = arith.mulf %130, %136 : vector<2x32xf32>
    %138 = vector.extract_strided_slice %12 {offsets = [6, 0], sizes = [2, 128], strides = [1, 1]} : vector<16x128xf32> to vector<2x128xf32>
    %cst_33 = arith.constant dense<0.000000e+00> : vector<2x128xf32>
    %139 = tpu.matmul %118, %18, %cst_33 {dimension_numbers = #tpu.dot_dimension_numbers<[1], [0], [0], [1], [0, 0, 1, 1], [], []>} : vector<2x32xf32>, vector<32x128xf32>, vector<2x128xf32> -> vector<2x128xf32>
    %140 = arith.addf %138, %139 : vector<2x128xf32>
    %141 = vector.extract_strided_slice %140 {offsets = [0, 0], sizes = [2, 96], strides = [1, 1]} : vector<2x128xf32> to vector<2x96xf32>
    %142 = arith.negf %141 : vector<2x96xf32>
    %143 = math.exp %142 : vector<2x96xf32>
    %cst_34 = arith.constant 1.000000e+00 : f32
    %144 = vector.broadcast %cst_34 : f32 to vector<2x96xf32>
    %145 = arith.addf %144, %143 : vector<2x96xf32>
    %146 = arith.divf %144, %145 : vector<2x96xf32>
    %147 = vector.extract_strided_slice %146 {offsets = [0, 0], sizes = [2, 32], strides = [1, 1]} : vector<2x96xf32> to vector<2x32xf32>
    %148 = vector.extract_strided_slice %146 {offsets = [0, 32], sizes = [2, 32], strides = [1, 1]} : vector<2x96xf32> to vector<2x32xf32>
    %149 = vector.extract_strided_slice %146 {offsets = [0, 64], sizes = [2, 32], strides = [1, 1]} : vector<2x96xf32> to vector<2x32xf32>
    %150 = vector.extract_strided_slice %140 {offsets = [0, 96], sizes = [2, 32], strides = [1, 1]} : vector<2x128xf32> to vector<2x32xf32>
    %151 = math.tanh %150 : vector<2x32xf32>
    %152 = arith.mulf %148, %116 : vector<2x32xf32>
    %153 = arith.mulf %147, %151 : vector<2x32xf32>
    %154 = arith.addf %152, %153 : vector<2x32xf32>
    %155 = math.tanh %154 : vector<2x32xf32>
    %156 = arith.mulf %149, %155 : vector<2x32xf32>
    %157 = vector.extract_strided_slice %17 {offsets = [8, 0], sizes = [2, 128], strides = [1, 1]} : vector<16x128xf32> to vector<2x128xf32>
    %cst_35 = arith.constant dense<0.000000e+00> : vector<2x128xf32>
    %158 = tpu.matmul %137, %19, %cst_35 {dimension_numbers = #tpu.dot_dimension_numbers<[1], [0], [0], [1], [0, 0, 1, 1], [], []>} : vector<2x32xf32>, vector<32x128xf32>, vector<2x128xf32> -> vector<2x128xf32>
    %159 = arith.addf %157, %158 : vector<2x128xf32>
    %160 = vector.extract_strided_slice %159 {offsets = [0, 0], sizes = [2, 96], strides = [1, 1]} : vector<2x128xf32> to vector<2x96xf32>
    %161 = arith.negf %160 : vector<2x96xf32>
    %162 = math.exp %161 : vector<2x96xf32>
    %cst_36 = arith.constant 1.000000e+00 : f32
    %163 = vector.broadcast %cst_36 : f32 to vector<2x96xf32>
    %164 = arith.addf %163, %162 : vector<2x96xf32>
    %165 = arith.divf %163, %164 : vector<2x96xf32>
    %166 = vector.extract_strided_slice %165 {offsets = [0, 0], sizes = [2, 32], strides = [1, 1]} : vector<2x96xf32> to vector<2x32xf32>
    %167 = vector.extract_strided_slice %165 {offsets = [0, 32], sizes = [2, 32], strides = [1, 1]} : vector<2x96xf32> to vector<2x32xf32>
    %168 = vector.extract_strided_slice %165 {offsets = [0, 64], sizes = [2, 32], strides = [1, 1]} : vector<2x96xf32> to vector<2x32xf32>
    %169 = vector.extract_strided_slice %159 {offsets = [0, 96], sizes = [2, 32], strides = [1, 1]} : vector<2x128xf32> to vector<2x32xf32>
    %170 = math.tanh %169 : vector<2x32xf32>
    %171 = arith.mulf %167, %135 : vector<2x32xf32>
    %172 = arith.mulf %166, %170 : vector<2x32xf32>
    %173 = arith.addf %171, %172 : vector<2x32xf32>
    %174 = math.tanh %173 : vector<2x32xf32>
    %175 = arith.mulf %168, %174 : vector<2x32xf32>
    %176 = vector.extract_strided_slice %12 {offsets = [8, 0], sizes = [2, 128], strides = [1, 1]} : vector<16x128xf32> to vector<2x128xf32>
    %cst_37 = arith.constant dense<0.000000e+00> : vector<2x128xf32>
    %177 = tpu.matmul %156, %18, %cst_37 {dimension_numbers = #tpu.dot_dimension_numbers<[1], [0], [0], [1], [0, 0, 1, 1], [], []>} : vector<2x32xf32>, vector<32x128xf32>, vector<2x128xf32> -> vector<2x128xf32>
    %178 = arith.addf %176, %177 : vector<2x128xf32>
    %179 = vector.extract_strided_slice %178 {offsets = [0, 0], sizes = [2, 96], strides = [1, 1]} : vector<2x128xf32> to vector<2x96xf32>
    %180 = arith.negf %179 : vector<2x96xf32>
    %181 = math.exp %180 : vector<2x96xf32>
    %cst_38 = arith.constant 1.000000e+00 : f32
    %182 = vector.broadcast %cst_38 : f32 to vector<2x96xf32>
    %183 = arith.addf %182, %181 : vector<2x96xf32>
    %184 = arith.divf %182, %183 : vector<2x96xf32>
    %185 = vector.extract_strided_slice %184 {offsets = [0, 0], sizes = [2, 32], strides = [1, 1]} : vector<2x96xf32> to vector<2x32xf32>
    %186 = vector.extract_strided_slice %184 {offsets = [0, 32], sizes = [2, 32], strides = [1, 1]} : vector<2x96xf32> to vector<2x32xf32>
    %187 = vector.extract_strided_slice %184 {offsets = [0, 64], sizes = [2, 32], strides = [1, 1]} : vector<2x96xf32> to vector<2x32xf32>
    %188 = vector.extract_strided_slice %178 {offsets = [0, 96], sizes = [2, 32], strides = [1, 1]} : vector<2x128xf32> to vector<2x32xf32>
    %189 = math.tanh %188 : vector<2x32xf32>
    %190 = arith.mulf %186, %154 : vector<2x32xf32>
    %191 = arith.mulf %185, %189 : vector<2x32xf32>
    %192 = arith.addf %190, %191 : vector<2x32xf32>
    %193 = math.tanh %192 : vector<2x32xf32>
    %194 = arith.mulf %187, %193 : vector<2x32xf32>
    %195 = vector.extract_strided_slice %17 {offsets = [6, 0], sizes = [2, 128], strides = [1, 1]} : vector<16x128xf32> to vector<2x128xf32>
    %cst_39 = arith.constant dense<0.000000e+00> : vector<2x128xf32>
    %196 = tpu.matmul %175, %19, %cst_39 {dimension_numbers = #tpu.dot_dimension_numbers<[1], [0], [0], [1], [0, 0, 1, 1], [], []>} : vector<2x32xf32>, vector<32x128xf32>, vector<2x128xf32> -> vector<2x128xf32>
    %197 = arith.addf %195, %196 : vector<2x128xf32>
    %198 = vector.extract_strided_slice %197 {offsets = [0, 0], sizes = [2, 96], strides = [1, 1]} : vector<2x128xf32> to vector<2x96xf32>
    %199 = arith.negf %198 : vector<2x96xf32>
    %200 = math.exp %199 : vector<2x96xf32>
    %cst_40 = arith.constant 1.000000e+00 : f32
    %201 = vector.broadcast %cst_40 : f32 to vector<2x96xf32>
    %202 = arith.addf %201, %200 : vector<2x96xf32>
    %203 = arith.divf %201, %202 : vector<2x96xf32>
    %204 = vector.extract_strided_slice %203 {offsets = [0, 0], sizes = [2, 32], strides = [1, 1]} : vector<2x96xf32> to vector<2x32xf32>
    %205 = vector.extract_strided_slice %203 {offsets = [0, 32], sizes = [2, 32], strides = [1, 1]} : vector<2x96xf32> to vector<2x32xf32>
    %206 = vector.extract_strided_slice %203 {offsets = [0, 64], sizes = [2, 32], strides = [1, 1]} : vector<2x96xf32> to vector<2x32xf32>
    %207 = vector.extract_strided_slice %197 {offsets = [0, 96], sizes = [2, 32], strides = [1, 1]} : vector<2x128xf32> to vector<2x32xf32>
    %208 = math.tanh %207 : vector<2x32xf32>
    %209 = arith.mulf %205, %173 : vector<2x32xf32>
    %210 = arith.mulf %204, %208 : vector<2x32xf32>
    %211 = arith.addf %209, %210 : vector<2x32xf32>
    %212 = math.tanh %211 : vector<2x32xf32>
    %213 = arith.mulf %206, %212 : vector<2x32xf32>
    %214 = vector.extract_strided_slice %12 {offsets = [10, 0], sizes = [2, 128], strides = [1, 1]} : vector<16x128xf32> to vector<2x128xf32>
    %cst_41 = arith.constant dense<0.000000e+00> : vector<2x128xf32>
    %215 = tpu.matmul %194, %18, %cst_41 {dimension_numbers = #tpu.dot_dimension_numbers<[1], [0], [0], [1], [0, 0, 1, 1], [], []>} : vector<2x32xf32>, vector<32x128xf32>, vector<2x128xf32> -> vector<2x128xf32>
    %216 = arith.addf %214, %215 : vector<2x128xf32>
    %217 = vector.extract_strided_slice %216 {offsets = [0, 0], sizes = [2, 96], strides = [1, 1]} : vector<2x128xf32> to vector<2x96xf32>
    %218 = arith.negf %217 : vector<2x96xf32>
    %219 = math.exp %218 : vector<2x96xf32>
    %cst_42 = arith.constant 1.000000e+00 : f32
    %220 = vector.broadcast %cst_42 : f32 to vector<2x96xf32>
    %221 = arith.addf %220, %219 : vector<2x96xf32>
    %222 = arith.divf %220, %221 : vector<2x96xf32>
    %223 = vector.extract_strided_slice %222 {offsets = [0, 0], sizes = [2, 32], strides = [1, 1]} : vector<2x96xf32> to vector<2x32xf32>
    %224 = vector.extract_strided_slice %222 {offsets = [0, 32], sizes = [2, 32], strides = [1, 1]} : vector<2x96xf32> to vector<2x32xf32>
    %225 = vector.extract_strided_slice %222 {offsets = [0, 64], sizes = [2, 32], strides = [1, 1]} : vector<2x96xf32> to vector<2x32xf32>
    %226 = vector.extract_strided_slice %216 {offsets = [0, 96], sizes = [2, 32], strides = [1, 1]} : vector<2x128xf32> to vector<2x32xf32>
    %227 = math.tanh %226 : vector<2x32xf32>
    %228 = arith.mulf %224, %192 : vector<2x32xf32>
    %229 = arith.mulf %223, %227 : vector<2x32xf32>
    %230 = arith.addf %228, %229 : vector<2x32xf32>
    %231 = math.tanh %230 : vector<2x32xf32>
    %232 = arith.mulf %225, %231 : vector<2x32xf32>
    %233 = vector.extract_strided_slice %17 {offsets = [4, 0], sizes = [2, 128], strides = [1, 1]} : vector<16x128xf32> to vector<2x128xf32>
    %cst_43 = arith.constant dense<0.000000e+00> : vector<2x128xf32>
    %234 = tpu.matmul %213, %19, %cst_43 {dimension_numbers = #tpu.dot_dimension_numbers<[1], [0], [0], [1], [0, 0, 1, 1], [], []>} : vector<2x32xf32>, vector<32x128xf32>, vector<2x128xf32> -> vector<2x128xf32>
    %235 = arith.addf %233, %234 : vector<2x128xf32>
    %236 = vector.extract_strided_slice %235 {offsets = [0, 0], sizes = [2, 96], strides = [1, 1]} : vector<2x128xf32> to vector<2x96xf32>
    %237 = arith.negf %236 : vector<2x96xf32>
    %238 = math.exp %237 : vector<2x96xf32>
    %cst_44 = arith.constant 1.000000e+00 : f32
    %239 = vector.broadcast %cst_44 : f32 to vector<2x96xf32>
    %240 = arith.addf %239, %238 : vector<2x96xf32>
    %241 = arith.divf %239, %240 : vector<2x96xf32>
    %242 = vector.extract_strided_slice %241 {offsets = [0, 0], sizes = [2, 32], strides = [1, 1]} : vector<2x96xf32> to vector<2x32xf32>
    %243 = vector.extract_strided_slice %241 {offsets = [0, 32], sizes = [2, 32], strides = [1, 1]} : vector<2x96xf32> to vector<2x32xf32>
    %244 = vector.extract_strided_slice %241 {offsets = [0, 64], sizes = [2, 32], strides = [1, 1]} : vector<2x96xf32> to vector<2x32xf32>
    %245 = vector.extract_strided_slice %235 {offsets = [0, 96], sizes = [2, 32], strides = [1, 1]} : vector<2x128xf32> to vector<2x32xf32>
    %246 = math.tanh %245 : vector<2x32xf32>
    %247 = arith.mulf %243, %211 : vector<2x32xf32>
    %248 = arith.mulf %242, %246 : vector<2x32xf32>
    %249 = arith.addf %247, %248 : vector<2x32xf32>
    %250 = math.tanh %249 : vector<2x32xf32>
    %251 = arith.mulf %244, %250 : vector<2x32xf32>
    %252 = vector.extract_strided_slice %12 {offsets = [12, 0], sizes = [2, 128], strides = [1, 1]} : vector<16x128xf32> to vector<2x128xf32>
    %cst_45 = arith.constant dense<0.000000e+00> : vector<2x128xf32>
    %253 = tpu.matmul %232, %18, %cst_45 {dimension_numbers = #tpu.dot_dimension_numbers<[1], [0], [0], [1], [0, 0, 1, 1], [], []>} : vector<2x32xf32>, vector<32x128xf32>, vector<2x128xf32> -> vector<2x128xf32>
    %254 = arith.addf %252, %253 : vector<2x128xf32>
    %255 = vector.extract_strided_slice %254 {offsets = [0, 0], sizes = [2, 96], strides = [1, 1]} : vector<2x128xf32> to vector<2x96xf32>
    %256 = arith.negf %255 : vector<2x96xf32>
    %257 = math.exp %256 : vector<2x96xf32>
    %cst_46 = arith.constant 1.000000e+00 : f32
    %258 = vector.broadcast %cst_46 : f32 to vector<2x96xf32>
    %259 = arith.addf %258, %257 : vector<2x96xf32>
    %260 = arith.divf %258, %259 : vector<2x96xf32>
    %261 = vector.extract_strided_slice %260 {offsets = [0, 0], sizes = [2, 32], strides = [1, 1]} : vector<2x96xf32> to vector<2x32xf32>
    %262 = vector.extract_strided_slice %260 {offsets = [0, 32], sizes = [2, 32], strides = [1, 1]} : vector<2x96xf32> to vector<2x32xf32>
    %263 = vector.extract_strided_slice %260 {offsets = [0, 64], sizes = [2, 32], strides = [1, 1]} : vector<2x96xf32> to vector<2x32xf32>
    %264 = vector.extract_strided_slice %254 {offsets = [0, 96], sizes = [2, 32], strides = [1, 1]} : vector<2x128xf32> to vector<2x32xf32>
    %265 = math.tanh %264 : vector<2x32xf32>
    %266 = arith.mulf %262, %230 : vector<2x32xf32>
    %267 = arith.mulf %261, %265 : vector<2x32xf32>
    %268 = arith.addf %266, %267 : vector<2x32xf32>
    %269 = math.tanh %268 : vector<2x32xf32>
    %270 = arith.mulf %263, %269 : vector<2x32xf32>
    %271 = vector.extract_strided_slice %17 {offsets = [2, 0], sizes = [2, 128], strides = [1, 1]} : vector<16x128xf32> to vector<2x128xf32>
    %cst_47 = arith.constant dense<0.000000e+00> : vector<2x128xf32>
    %272 = tpu.matmul %251, %19, %cst_47 {dimension_numbers = #tpu.dot_dimension_numbers<[1], [0], [0], [1], [0, 0, 1, 1], [], []>} : vector<2x32xf32>, vector<32x128xf32>, vector<2x128xf32> -> vector<2x128xf32>
    %273 = arith.addf %271, %272 : vector<2x128xf32>
    %274 = vector.extract_strided_slice %273 {offsets = [0, 0], sizes = [2, 96], strides = [1, 1]} : vector<2x128xf32> to vector<2x96xf32>
    %275 = arith.negf %274 : vector<2x96xf32>
    %276 = math.exp %275 : vector<2x96xf32>
    %cst_48 = arith.constant 1.000000e+00 : f32
    %277 = vector.broadcast %cst_48 : f32 to vector<2x96xf32>
    %278 = arith.addf %277, %276 : vector<2x96xf32>
    %279 = arith.divf %277, %278 : vector<2x96xf32>
    %280 = vector.extract_strided_slice %279 {offsets = [0, 0], sizes = [2, 32], strides = [1, 1]} : vector<2x96xf32> to vector<2x32xf32>
    %281 = vector.extract_strided_slice %279 {offsets = [0, 32], sizes = [2, 32], strides = [1, 1]} : vector<2x96xf32> to vector<2x32xf32>
    %282 = vector.extract_strided_slice %279 {offsets = [0, 64], sizes = [2, 32], strides = [1, 1]} : vector<2x96xf32> to vector<2x32xf32>
    %283 = vector.extract_strided_slice %273 {offsets = [0, 96], sizes = [2, 32], strides = [1, 1]} : vector<2x128xf32> to vector<2x32xf32>
    %284 = math.tanh %283 : vector<2x32xf32>
    %285 = arith.mulf %281, %249 : vector<2x32xf32>
    %286 = arith.mulf %280, %284 : vector<2x32xf32>
    %287 = arith.addf %285, %286 : vector<2x32xf32>
    %288 = math.tanh %287 : vector<2x32xf32>
    %289 = arith.mulf %282, %288 : vector<2x32xf32>
    %290 = vector.extract_strided_slice %12 {offsets = [14, 0], sizes = [2, 128], strides = [1, 1]} : vector<16x128xf32> to vector<2x128xf32>
    %cst_49 = arith.constant dense<0.000000e+00> : vector<2x128xf32>
    %291 = tpu.matmul %270, %18, %cst_49 {dimension_numbers = #tpu.dot_dimension_numbers<[1], [0], [0], [1], [0, 0, 1, 1], [], []>} : vector<2x32xf32>, vector<32x128xf32>, vector<2x128xf32> -> vector<2x128xf32>
    %292 = arith.addf %290, %291 : vector<2x128xf32>
    %293 = vector.extract_strided_slice %292 {offsets = [0, 0], sizes = [2, 96], strides = [1, 1]} : vector<2x128xf32> to vector<2x96xf32>
    %294 = arith.negf %293 : vector<2x96xf32>
    %295 = math.exp %294 : vector<2x96xf32>
    %cst_50 = arith.constant 1.000000e+00 : f32
    %296 = vector.broadcast %cst_50 : f32 to vector<2x96xf32>
    %297 = arith.addf %296, %295 : vector<2x96xf32>
    %298 = arith.divf %296, %297 : vector<2x96xf32>
    %299 = vector.extract_strided_slice %298 {offsets = [0, 0], sizes = [2, 32], strides = [1, 1]} : vector<2x96xf32> to vector<2x32xf32>
    %300 = vector.extract_strided_slice %298 {offsets = [0, 32], sizes = [2, 32], strides = [1, 1]} : vector<2x96xf32> to vector<2x32xf32>
    %301 = vector.extract_strided_slice %298 {offsets = [0, 64], sizes = [2, 32], strides = [1, 1]} : vector<2x96xf32> to vector<2x32xf32>
    %302 = vector.extract_strided_slice %292 {offsets = [0, 96], sizes = [2, 32], strides = [1, 1]} : vector<2x128xf32> to vector<2x32xf32>
    %303 = math.tanh %302 : vector<2x32xf32>
    %304 = arith.mulf %300, %268 : vector<2x32xf32>
    %305 = arith.mulf %299, %303 : vector<2x32xf32>
    %306 = arith.addf %304, %305 : vector<2x32xf32>
    %307 = math.tanh %306 : vector<2x32xf32>
    %308 = arith.mulf %301, %307 : vector<2x32xf32>
    %309 = vector.extract_strided_slice %17 {offsets = [0, 0], sizes = [2, 128], strides = [1, 1]} : vector<16x128xf32> to vector<2x128xf32>
    %cst_51 = arith.constant dense<0.000000e+00> : vector<2x128xf32>
    %310 = tpu.matmul %289, %19, %cst_51 {dimension_numbers = #tpu.dot_dimension_numbers<[1], [0], [0], [1], [0, 0, 1, 1], [], []>} : vector<2x32xf32>, vector<32x128xf32>, vector<2x128xf32> -> vector<2x128xf32>
    %311 = arith.addf %309, %310 : vector<2x128xf32>
    %312 = vector.extract_strided_slice %311 {offsets = [0, 0], sizes = [2, 96], strides = [1, 1]} : vector<2x128xf32> to vector<2x96xf32>
    %313 = arith.negf %312 : vector<2x96xf32>
    %314 = math.exp %313 : vector<2x96xf32>
    %cst_52 = arith.constant 1.000000e+00 : f32
    %315 = vector.broadcast %cst_52 : f32 to vector<2x96xf32>
    %316 = arith.addf %315, %314 : vector<2x96xf32>
    %317 = arith.divf %315, %316 : vector<2x96xf32>
    %318 = vector.extract_strided_slice %317 {offsets = [0, 0], sizes = [2, 32], strides = [1, 1]} : vector<2x96xf32> to vector<2x32xf32>
    %319 = vector.extract_strided_slice %317 {offsets = [0, 32], sizes = [2, 32], strides = [1, 1]} : vector<2x96xf32> to vector<2x32xf32>
    %320 = vector.extract_strided_slice %317 {offsets = [0, 64], sizes = [2, 32], strides = [1, 1]} : vector<2x96xf32> to vector<2x32xf32>
    %321 = vector.extract_strided_slice %311 {offsets = [0, 96], sizes = [2, 32], strides = [1, 1]} : vector<2x128xf32> to vector<2x32xf32>
    %322 = math.tanh %321 : vector<2x32xf32>
    %323 = arith.mulf %319, %287 : vector<2x32xf32>
    %324 = arith.mulf %318, %322 : vector<2x32xf32>
    %325 = arith.addf %323, %324 : vector<2x32xf32>
    %326 = math.tanh %325 : vector<2x32xf32>
    %327 = arith.mulf %320, %326 : vector<2x32xf32>
    %328 = tpu.concatenate %308, %327 in 1 : vector<2x32xf32>, vector<2x32xf32> -> vector<2x64xf32>
    %c0_53 = arith.constant 0 : index
    %c0_54 = arith.constant 0 : index
    %329 = vector.load %arg8[%c0_53, %c0_54] : memref<64x2xf32, #tpu.memory_space<vmem>>, vector<64x2xf32>
    %cst_55 = arith.constant dense<0.000000e+00> : vector<2x2xf32>
    %330 = tpu.matmul %328, %329, %cst_55 {dimension_numbers = #tpu.dot_dimension_numbers<[1], [0], [0], [1], [0, 0, 1, 1], [], []>} : vector<2x64xf32>, vector<64x2xf32>, vector<2x2xf32> -> vector<2x2xf32>
    %c0_56 = arith.constant 0 : index
    %c0_57 = arith.constant 0 : index
    %331 = vector.load %arg9[%c0_56, %c0_57] : memref<1x2xf32, #tpu.memory_space<vmem>>, vector<1x2xf32>
    %332 = vector.broadcast %331 : vector<1x2xf32> to vector<2x2xf32>
    %333 = arith.addf %330, %332 : vector<2x2xf32>
    %cst_58 = arith.constant dense<0xFF800000> : vector<2xf32>
    %334 = vector.multi_reduction <maximumf>, %333, %cst_58 [1] : vector<2x2xf32> to vector<2xf32>
    %335 = vector.shape_cast %334 : vector<2xf32> to vector<2x1xf32>
    %336 = vector.broadcast %335 : vector<2x1xf32> to vector<2x2xf32>
    %337 = arith.subf %333, %336 : vector<2x2xf32>
    %338 = math.exp %337 : vector<2x2xf32>
    %cst_59 = arith.constant dense<0.000000e+00> : vector<2xf32>
    %339 = vector.multi_reduction <add>, %338, %cst_59 [1] : vector<2x2xf32> to vector<2xf32>
    %340 = vector.shape_cast %339 : vector<2xf32> to vector<2x1xf32>
    %341 = vector.broadcast %340 : vector<2x1xf32> to vector<2x2xf32>
    %342 = arith.divf %338, %341 : vector<2x2xf32>
    %c0_60 = arith.constant 0 : index
    %c0_61 = arith.constant 0 : index
    %343 = vector.load %arg10[%c0_60, %c0_61] : memref<2x2xf32, #tpu.memory_space<vmem>>, vector<2x2xf32>
    tpu.vector_store %arg10[%c0_60, %c0_61], %342 {strides = array<i32>} : memref<2x2xf32, #tpu.memory_space<vmem>>, vector<2x2xf32>,
    return
  }
}

</mosaic_0001>

<bundles_post_ra>
// kernel: tpu_custom_call.1
= control target key start
LH: loop header
LB: loop body
LE: loop exit
PB: predicated region body
PF: predicated region fallthrough
CT: control target
= control target key end

     0   :  { %v2657_v2 = vmov 0   ;;  %s3154_s0 = inlined_call_operand.vmem [shape: s32[16,1], index: 0, kind: input, shape index: {}]   ;;  %s3155_s1 = inlined_call_operand.vmem [shape: f32[32,16], index: 1, kind: input, shape index: {}]   ;;  %s3156_s2 = inlined_call_operand.vmem [shape: f32[16,128], index: 2, kind: input, shape index: {}]   ;;  %s3157_s3 = inlined_call_operand.vmem [shape: f32[32,128], index: 3, kind: input, shape index: {}]   ;;  %s3158_s4 = inlined_call_operand.vmem [shape: f32[1,128], index: 4, kind: input, shape index: {}]   ;;  %s3159_s5 = inlined_call_operand.vmem [shape: f32[16,128], index: 5, kind: input, shape index: {}]   ;;  %s3160_s6 = inlined_call_operand.vmem [shape: f32[32,128], index: 6, kind: input, shape index: {}]   ;;  %s3161_s7 = inlined_call_operand.vmem [shape: f32[1,128], index: 7, kind: input, shape index: {}]   ;;  %s3162_s8 = inlined_call_operand.vmem [shape: f32[64,2], index: 8, kind: input, shape index: {}]   ;;  %s3163_s9 = inlined_call_operand.vmem [shape: f32[1,2], index: 9, kind: input, shape index: {}]   ;;  %s3164_s10 = inlined_call_operand.hbm [shape: f32[2,2], index: 10, kind: output, shape index: {}]  }
   0x1   :  { %v36_v0 = vld [vmem:[%s3154_s0] sm:$0xff]  ;;  %v55_v1 = vld [vmem:[%s3155_s1 + $0x18] sm:$0xff]  ;;  %2502 = vset.pattern.permute.xlu0 %v2657_v2  ;;  %v54_v3 = vld [vmem:[%s3155_s1 + $0x10] sm:$0xff] }
   0x2   :  { %2275 = vmatprep.subr.mxu1 %v55_v1  ;;  %41 = vperm.xlu0 %2502, %v36_v0   ;;  %v53_v4 = vld [vmem:[%s3155_s1 + $0x8] sm:$0xff] }
   0x3   :  { %2276 = vmatpush3.msra.mxu1 %v55_v1 }
   0x4   :  { %15 = vsyncpa [#allocation3], 0  ;;  %v37_v5 = vld [vmem:[%s3154_s0 + $0x8] sm:$0xff]  ;;  %2277 = vmatprep.subr.mxu1 %v54_v3  ;;  %v2658_v6 = vmov 0.0   ;;  %v52_v7 = vld [vmem:[%s3155_s1] sm:$0xff]  ;;  %v38_v9 = vlaneseq  ;;  %vm56_vm0 = vcmask 261120  }
   0x5   :  { %2300 = vmatprep.subr.mxu0 %v2658_v6  ;;  %2278 = vmatpush3.msra.mxu1 %v54_v3  ;;  %v139_v8 = vld [vmem:[%s3156_s2 + $0x8] sm:$0xff]  ;;  %v138_v15 = vld [vmem:[%s3156_s2] sm:$0xff]  ;;  %v2751_v16 = vld [vmem:[%s3157_s3 + $0x18] sm:$0xff]  ;;  %vm2659_vm3 = vmmov 0   ;;  %vm147_vm4 = vcmask 130048   ;;  %s2662_s19 = smov 96  }
   0x6   :  { %2279 = vmatprep.subr.mxu1 %v53_v4  ;;  %44 = vperm.xlu0 %2502, %v37_v5   ;;  %v39_v10 = vand.u32 127, %v38_v9  ;;  %v230_v17 = vld [vmem:[%s3159_s5 + $0x8] sm:$0xff]  ;;  %v2761_v18 = vld [vmem:[%s3157_s3 + $0x10] sm:$0xff]  ;;  %v2775_v20 = vld [vmem:[%s3157_s3] sm:$0xff]  ;;  %vm2030_vm5 = vcmask 523264   ;;  %vm2103_vm6 = vcmask 9216  }
   0x7   :  { %2280 = vmatpush3.msra.mxu1 %v53_v4  ;;  %2301 = vmatpush3.msra.mxu0 %v2751_v16  ;;  %v2768_v19 = vld [vmem:[%s3157_s3 + $0x8] sm:$0xff]  ;;  %v229_v23 = vld [vmem:[%s3159_s5] sm:$0xff]  ;;  %v2798_v24 = vld [vmem:[%s3160_s6 + $0x18] sm:$0xff] }
   0x8   :  { %2281 = vmatprep.subr.mxu1 %v52_v7  ;;  %2302 = vmatprep.subr.mxu0 %v2658_v6  ;;  %v2804_v25 = vld [vmem:[%s3160_s6 + $0x10] sm:$0xff]  ;;  %v2813_v26 = vld [vmem:[%s3160_s6 + $0x8] sm:$0xff]  ;;  %v2820_v27 = vld [vmem:[%s3160_s6] sm:$0xff] }
   0x9   :  { %2282 = vmatpush3.msra.mxu1 %v52_v7  ;;  %2303 = vmatpush3.msra.mxu0 %v2761_v18  ;;  %v2134_v30 = vld [vmem:[%s3158_s4] ss:$0 sm:$0xff]  ;;  %s2660_s4 = smov 32  }
   0xa   :  { %2286 = vmatprep.subr.mxu1 %v139_v8  ;;  %2304 = vmatprep.subr.mxu0 %v2658_v6  ;;  %v2137_v35 = vld [vmem:[%s3161_s7] ss:$0 sm:$0xff]  ;;  %s2661_s7 = smov 64  }
   0xb   :  { %2305 = vmatpush3.msra.mxu0 %v2768_v19  ;;  %2308 = vmatprep.mubr.msk.f32.mxu0 %vm2659_vm3, %v2658_v6 }
   0xc   :  { %2306 = vmatprep.subr.mxu0 %v2658_v6 }
   0xd   :  { %2307 = vmatpush3.msra.mxu0 %v2775_v20 }
   0xe   :  { %2309 = vmatmul.mubr.f32.vlgmr.msra.gmra.mxu0 %v2658_v6  ;;  %2322 = vmatprep.subr.mxu0 %v2658_v6 }
   0xf   :  { %2323 = vmatpush3.msra.mxu0 %v2751_v16  ;;  %2330 = vmatprep.mubr.msk.f32.mxu0 %vm2659_vm3, %v2658_v6 }
  0x10   :  { %2324 = vmatprep.subr.mxu0 %v2658_v6 }
  0x11   :  { %2325 = vmatpush3.msra.mxu0 %v2761_v18 }
  0x12   :  { %2326 = vmatprep.subr.mxu0 %v2658_v6 }
  0x13   :  { %2327 = vmatpush3.msra.mxu0 %v2768_v19 }
  0x14   :  { %2328 = vmatprep.subr.mxu0 %v2658_v6 }
  0x15   :  { %2329 = vmatpush3.msra.mxu0 %v2775_v20 }
  0x16   :  { %2344 = vmatprep.subr.mxu0 %v2658_v6 }
  0x7d   :  { %v42_v11 = vpop.permute.xlu0 %41 }
  0x7e   :  { %vm46_vm1 = vcmp.eq.s32.totalorder %v42_v11, %v39_v10 }
  0x7f   :  { %v2130_v12 = vsel %vm46_vm1, 1.0, %v2658_v6 }
  0x80   :  { %2283 = vmatprep.mubr.msk.f32.mxu1 %vm56_vm0, %v2130_v12 }
  0x81   :  { %v45_v13 = vpop.permute.xlu0 %44 }
  0x82   :  { %vm47_vm2 = vcmp.eq.s32.totalorder %v45_v13, %v39_v10 }
  0x83   :  { %v2131_v14 = vsel %vm47_vm2, 1.0, %v2658_v6 }
  0x84   :  { %2284 = vmatmul.mubr.msk.f32.vlgmr.msra.gmra.mxu1 %vm56_vm0, %v2131_v14 }
  0x85   :  { %2287 = vmatpush3.msra.mxu1 %v139_v8 }
  0x86   :  { %2288 = vmatprep.subr.mxu1 %v138_v15 }
  0x87   :  { %2289 = vmatpush3.msra.mxu1 %v138_v15 }
  0x88   :  { %2293 = vmatprep.subr.mxu1 %v230_v17 }
  0xce   :  { %v390_v28 = vpop.f32.mrf.mxu0 }
  0xd0   :  { %v2310_v29 = vpop.f32.mrf.mxu0 }
 0x144   :  { %v2285_v21 = vpop.f32.mrf.mxu1 }
 0x146   :  { %v129_v22 = vpop.f32.mrf.mxu1 }
 0x147   :  { %2290 = vmatprep.mubr.msk.f32.mxu1 %vm147_vm4, %v129_v22 }
 0x148   :  { %2291 = vmatmul.mubr.msk.f32.vlgmr.msra.gmra.mxu1 %vm147_vm4, %v2285_v21 }
 0x149   :  { %2294 = vmatpush3.msra.mxu1 %v230_v17  ;;  %2297 = vmatprep.mubr.msk.f32.mxu1 %vm147_vm4, %v129_v22 }
 0x14a   :  { %2295 = vmatprep.subr.mxu1 %v229_v23 }
 0x14b   :  { %2296 = vmatpush3.msra.mxu1 %v229_v23 }
 0x14c   :  { %2311 = vmatprep.subr.mxu1 %v2658_v6  ;;  %2298 = vmatmul.mubr.msk.f32.vlgmr.msra.gmra.mxu1 %vm147_vm4, %v2285_v21 }
 0x14d   :  { %2312 = vmatpush3.msra.mxu1 %v2798_v24  ;;  %2319 = vmatprep.mubr.msk.f32.mxu1 %vm2659_vm3, %v2658_v6 }
 0x14e   :  { %2313 = vmatprep.subr.mxu1 %v2658_v6 }
 0x14f   :  { %2314 = vmatpush3.msra.mxu1 %v2804_v25 }
 0x150   :  { %2315 = vmatprep.subr.mxu1 %v2658_v6 }
 0x151   :  { %2316 = vmatpush3.msra.mxu1 %v2813_v26 }
 0x152   :  { %2317 = vmatprep.subr.mxu1 %v2658_v6 }
 0x153   :  { %2318 = vmatpush3.msra.mxu1 %v2820_v27 }
 0x154   :  { %2320 = vmatmul.mubr.f32.vlgmr.msra.gmra.mxu1 %v2658_v6  ;;  %2333 = vmatprep.subr.mxu1 %v2658_v6 }
 0x155   :  { %2334 = vmatpush3.msra.mxu1 %v2798_v24  ;;  %2341 = vmatprep.mubr.msk.f32.mxu1 %vm2659_vm3, %v2658_v6 }
 0x156   :  { %2335 = vmatprep.subr.mxu1 %v2658_v6 }
 0x157   :  { %2336 = vmatpush3.msra.mxu1 %v2804_v25 }
 0x158   :  { %2337 = vmatprep.subr.mxu1 %v2658_v6 }
 0x159   :  { %2338 = vmatpush3.msra.mxu1 %v2813_v26 }
 0x15a   :  { %2339 = vmatprep.subr.mxu1 %v2658_v6 }
 0x15b   :  { %2340 = vmatpush3.msra.mxu1 %v2820_v27 }
 0x15c   :  { %2355 = vmatprep.subr.mxu1 %v2658_v6 }
 0x208   :  { %v2292_v31 = vpop.f32.mrf.mxu1 }
 0x209   :  { %v2840_v32 = vadd.f32 %v2292_v31, %v2134_v30 }
 0x20a   :  { %v220_v33 = vpop.f32.mrf.mxu1 }
 0x20b   :  { %v2847_v39 = vadd.f32 %v2134_v30, %v220_v33 }
 0x20c   :  { %v2299_v34 = vpop.f32.mrf.mxu1 }
 0x20d   :  { %v2849_v40 = vadd.f32 %v2299_v34, %v2137_v35  ;;  %v394_v44 = vadd.f32 %v390_v28, %v2847_v39 }
 0x20e   :  { %v304_v36 = vpop.f32.mrf.mxu1 }
 0x20f   :  { %v2845_v37 = vadd.f32 %v2137_v35, %v304_v36  ;;  %v2140_v48 = vmul.f32 -1.442695, %v394_v44 }
 0x214   :  { %v485_v38 = vpop.f32.mrf.mxu1 }
 0x215   :  { %v490_v41 = vrot.slane %v485_v38, 2 }
 0x216   :  { %v2321_v42 = vpop.f32.mrf.mxu1 }
 0x217   :  { %v492_v43 = vadd.f32 %v490_v41, %v2849_v40 }
 0x219   :  { %2503 = vtanh.f32 %v492_v43  ;;  %v2141_v47 = vmul.f32 -1.442695, %v492_v43 }
 0x21a   :  { %2505 = vtanh.f32 %v394_v44 }
 0x21b   :  { %2507 = vpow2.f32 %v2141_v47 }
 0x21c   :  { %2509 = vpow2.f32 %v2140_v48 }
 0x226   :  { %v2504_v45 = vpop.eup %2503 }
 0x227   :  { %502 = vrot.lane.b32.xlu1 %v2504_v45, %s2660_s4  ;;  %v2506_v46 = vpop.eup %2505 }
 0x228   :  { %v2508_v49 = vpop.eup %2507 }
 0x229   :  { %v496_v50 = vadd.f32 1.0, %v2508_v49  ;;  %v2510_v51 = vpop.eup %2509 }
 0x22a   :  { %v398_v52 = vadd.f32 1.0, %v2510_v51 }
 0x22b   :  { %404 = vrot.lane.b32.xlu1 %v2506_v46, %s2660_s4  ;;  %2511 = vrcp.f32 %v496_v50 }
 0x22c   :  { %2513 = vrcp.f32 %v398_v52 }
 0x238   :  { %v2512_v53 = vpop.eup %2511 }
 0x239   :  { %v2514_v56 = vpop.eup %2513  ;;  %v500_v59 = vmul.f32 0.0, %v2512_v53 }
 0x23a   :  { %v402_v62 = vmul.f32 0.0, %v2514_v56 }
 0x299   :  { %v503_v54 = vpop.permute.xlu1 %502 }
 0x29a   :  { %v505_v55 = vmul.f32 %v2512_v53, %v503_v54 }
 0x29c   :  { %507 = vrot.lane.b32.xlu0 %v505_v55, %s2660_s4 }
 0x29d   :  { %v405_v57 = vpop.permute.xlu1 %404 }
 0x29e   :  { %v407_v58 = vmul.f32 %v2514_v56, %v405_v57 }
 0x2a0   :  { %409 = vrot.lane.b32.xlu1 %v407_v58, %s2660_s4 }
 0x30e   :  { %v508_v60 = vpop.permute.xlu0 %507 }
 0x30f   :  { %v2857_v61 = vadd.f32 %v508_v60, %v500_v59 }
 0x311   :  { %2515 = vtanh.f32 %v2857_v61  ;;  %v711_v45 = vrot.slane %v2857_v61, 2 }
 0x312   :  { %v410_v63 = vpop.permute.xlu1 %409 }
 0x313   :  { %v2860_v0 = vadd.f32 %v410_v63, %v402_v62 }
 0x315   :  { %2517 = vtanh.f32 %v2860_v0  ;;  %v604_v47 = vrot.slane %v2860_v0, 6 }
 0x31e   :  { %v2516_v1 = vpop.eup %2515 }
 0x31f   :  { %513 = vrot.lane.b32.xlu0 %v2516_v1, %s2660_s4 }
 0x322   :  { %v2518_v2 = vpop.eup %2517 }
 0x323   :  { %415 = vrot.lane.b32.xlu1 %v2518_v2, %s2660_s4 }
 0x391   :  { %v514_v3 = vpop.permute.xlu0 %513 }
 0x392   :  { %v516_v4 = vmul.f32 %v2512_v53, %v514_v3 }
 0x394   :  { %v624_v5 = vrot.slane %v516_v4, 6 }
 0x395   :  { %v416_v7 = vpop.permute.xlu1 %415 }
 0x396   :  { %v418_v8 = vmul.f32 %v2514_v56, %v416_v7  ;;  %625 = vrot.lane.b32.xlu1 %v624_v5, %s2661_s7 }
 0x398   :  { %518 = vrot.lane.b32.xlu0 %v418_v8, %s2661_s7 }
 0x408   :  { %v626_v9 = vpop.permute.xlu1 %625 }
 0x409   :  { %2342 = vmatmul.mubr.msk.f32.vlgmr.msra.gmra.mxu1 %vm56_vm0, %v626_v9 }
 0x40a   :  { %v519_v10 = vpop.permute.xlu0 %518  ;;  %2356 = vmatpush3.msra.mxu1 %v2798_v24  ;;  %2363 = vmatprep.mubr.msk.f32.mxu1 %vm2659_vm3, %v2658_v6 }
 0x40b   :  { %2331 = vmatmul.mubr.msk.f32.vlgmr.msra.gmra.mxu0 %vm56_vm0, %v519_v10  ;;  %2357 = vmatprep.subr.mxu1 %v2658_v6 }
 0x40c   :  { %2345 = vmatpush3.msra.mxu0 %v2751_v16  ;;  %2358 = vmatpush3.msra.mxu1 %v2804_v25 }
 0x40d   :  { %2346 = vmatprep.subr.mxu0 %v2658_v6  ;;  %2359 = vmatprep.subr.mxu1 %v2658_v6 }
 0x40e   :  { %2347 = vmatpush3.msra.mxu0 %v2761_v18  ;;  %2360 = vmatpush3.msra.mxu1 %v2813_v26 }
 0x40f   :  { %2348 = vmatprep.subr.mxu0 %v2658_v6  ;;  %2361 = vmatprep.subr.mxu1 %v2658_v6 }
 0x410   :  { %2349 = vmatpush3.msra.mxu0 %v2768_v19  ;;  %2362 = vmatpush3.msra.mxu1 %v2820_v27 }
 0x411   :  { %2350 = vmatprep.subr.mxu0 %v2658_v6  ;;  %2352 = vmatprep.mubr.msk.f32.mxu0 %vm2659_vm3, %v2658_v6 }
 0x412   :  { %2351 = vmatpush3.msra.mxu0 %v2775_v20  ;;  %2377 = vmatprep.subr.mxu1 %v2658_v6 }
 0x413   :  { %2366 = vmatprep.subr.mxu0 %v2658_v6 }
 0x4c9   :  { %v695_v11 = vpop.f32.mrf.mxu1 }
 0x4ca   :  { %v700_v12 = vrot.slane %v695_v11, 4 }
 0x4cb   :  { %v588_v13 = vpop.f32.mrf.mxu0  ;;  %v2343_v14 = vpop.f32.mrf.mxu1 }
 0x4cc   :  { %v702_v15 = vadd.f32 %v700_v12, %v2849_v40  ;;  %v593_v17 = vrot.slane %v588_v13, 6 }
 0x4cd   :  { %v2332_v21 = vpop.f32.mrf.mxu0 }
 0x4ce   :  { %2519 = vtanh.f32 %v702_v15  ;;  %v595_v22 = vadd.f32 %v593_v17, %v2847_v39  ;;  %v2145_v29 = vmul.f32 -1.442695, %v702_v15 }
 0x4d0   :  { %2521 = vtanh.f32 %v595_v22  ;;  %v2143_v30 = vmul.f32 -1.442695, %v595_v22 }
 0x4d1   :  { %2523 = vpow2.f32 %v2145_v29 }
 0x4d2   :  { %2525 = vpow2.f32 %v2143_v30 }
 0x4db   :  { %v2520_v23 = vpop.eup %2519 }
 0x4dc   :  { %715 = vrot.lane.b32.xlu1 %v2520_v23, %s2660_s4 }
 0x4dd   :  { %v2522_v28 = vpop.eup %2521 }
 0x4de   :  { %608 = vrot.lane.b32.xlu0 %v2522_v28, %s2660_s4  ;;  %v2524_v31 = vpop.eup %2523 }
 0x4df   :  { %v2526_v33 = vpop.eup %2525  ;;  %v706_v34 = vadd.f32 1.0, %v2524_v31 }
 0x4e0   :  { %v599_v35 = vadd.f32 1.0, %v2526_v33 }
 0x4e1   :  { %2527 = vrcp.f32 %v706_v34 }
 0x4e2   :  { %2529 = vrcp.f32 %v599_v35 }
 0x4ee   :  { %v2528_v36 = vpop.eup %2527 }
 0x4ef   :  { %v2530_v42 = vpop.eup %2529  ;;  %v713_v46 = vmul.f32 %v2528_v36, %v711_v45 }
 0x4f0   :  { %v606_v50 = vmul.f32 %v2530_v42, %v604_v47 }
 0x54e   :  { %v716_v38 = vpop.permute.xlu1 %715 }
 0x54f   :  { %v718_v41 = vmul.f32 %v2528_v36, %v716_v38 }
 0x550   :  { %v609_v43 = vpop.permute.xlu0 %608 }
 0x551   :  { %720 = vrot.lane.b32.xlu1 %v718_v41, %s2660_s4  ;;  %v611_v44 = vmul.f32 %v2530_v42, %v609_v43 }
 0x553   :  { %613 = vrot.lane.b32.xlu0 %v611_v44, %s2660_s4 }
 0x5c3   :  { %v721_v48 = vpop.permute.xlu1 %720 }
 0x5c4   :  { %v2897_v49 = vadd.f32 %v721_v48, %v713_v46 }
 0x5c5   :  { %v614_v51 = vpop.permute.xlu0 %613 }
 0x5c6   :  { %2531 = vtanh.f32 %v2897_v49  ;;  %v2900_v52 = vadd.f32 %v614_v51, %v606_v50  ;;  %v925_v30 = vrot.slane %v2897_v49, 2 }
 0x5c8   :  { %2533 = vtanh.f32 %v2900_v52  ;;  %v818_v33 = vrot.slane %v2900_v52, 6 }
 0x5d3   :  { %v2532_v53 = vpop.eup %2531 }
 0x5d4   :  { %726 = vrot.lane.b32.xlu1 %v2532_v53, %s2660_s4 }
 0x5d5   :  { %v2534_v54 = vpop.eup %2533 }
 0x5d6   :  { %619 = vrot.lane.b32.xlu0 %v2534_v54, %s2660_s4 }
 0x646   :  { %v727_v55 = vpop.permute.xlu1 %726 }
 0x647   :  { %v729_v56 = vmul.f32 %v2528_v36, %v727_v55 }
 0x648   :  { %v620_v58 = vpop.permute.xlu0 %619 }
 0x649   :  { %v838_v57 = vrot.slane %v729_v56, 4  ;;  %v622_v59 = vmul.f32 %v2530_v42, %v620_v58 }
 0x64b   :  { %839 = vrot.lane.b32.xlu1 %v838_v57, %s2661_s7  ;;  %v731_v60 = vrot.slane %v622_v59, 2 }
 0x64d   :  { %732 = vrot.lane.b32.xlu0 %v731_v60, %s2661_s7 }
 0x6bd   :  { %v840_v61 = vpop.permute.xlu1 %839 }
 0x6be   :  { %2364 = vmatmul.mubr.msk.f32.vlgmr.msra.gmra.mxu1 %vm56_vm0, %v840_v61 }
 0x6bf   :  { %2378 = vmatpush3.msra.mxu1 %v2798_v24  ;;  %2385 = vmatprep.mubr.msk.f32.mxu1 %vm2659_vm3, %v2658_v6  ;;  %v733_v62 = vpop.permute.xlu0 %732 }
 0x6c0   :  { %2379 = vmatprep.subr.mxu1 %v2658_v6  ;;  %2353 = vmatmul.mubr.msk.f32.vlgmr.msra.gmra.mxu0 %vm56_vm0, %v733_v62 }
 0x6c1   :  { %2380 = vmatpush3.msra.mxu1 %v2804_v25  ;;  %2367 = vmatpush3.msra.mxu0 %v2751_v16 }
 0x6c2   :  { %2381 = vmatprep.subr.mxu1 %v2658_v6  ;;  %2368 = vmatprep.subr.mxu0 %v2658_v6 }
 0x6c3   :  { %2382 = vmatpush3.msra.mxu1 %v2813_v26  ;;  %2369 = vmatpush3.msra.mxu0 %v2761_v18 }
 0x6c4   :  { %2383 = vmatprep.subr.mxu1 %v2658_v6  ;;  %2370 = vmatprep.subr.mxu0 %v2658_v6 }
 0x6c5   :  { %2384 = vmatpush3.msra.mxu1 %v2820_v27  ;;  %2371 = vmatpush3.msra.mxu0 %v2768_v19 }
 0x6c6   :  { %2374 = vmatprep.mubr.msk.f32.mxu0 %vm2659_vm3, %v2658_v6  ;;  %2372 = vmatprep.subr.mxu0 %v2658_v6 }
 0x6c7   :  { %2399 = vmatprep.subr.mxu1 %v2658_v6  ;;  %2373 = vmatpush3.msra.mxu0 %v2775_v20 }
 0x6c8   :  { %2388 = vmatprep.subr.mxu0 %v2658_v6 }
 0x77e   :  { %v909_v63 = vpop.f32.mrf.mxu1 }
 0x77f   :  { %v914_v0 = vrot.slane %v909_v63, 6 }
 0x780   :  { %v2365_v1 = vpop.f32.mrf.mxu1  ;;  %v802_v3 = vpop.f32.mrf.mxu0 }
 0x781   :  { %v916_v2 = vadd.f32 %v914_v0, %v2849_v40  ;;  %v807_v4 = vrot.slane %v802_v3, 4 }
 0x782   :  { %v2354_v5 = vpop.f32.mrf.mxu0 }
 0x783   :  { %2535 = vtanh.f32 %v916_v2  ;;  %v809_v7 = vadd.f32 %v807_v4, %v2847_v39  ;;  %v2149_v10 = vmul.f32 -1.442695, %v916_v2 }
 0x785   :  { %2537 = vtanh.f32 %v809_v7  ;;  %v2147_v11 = vmul.f32 -1.442695, %v809_v7 }
 0x786   :  { %2539 = vpow2.f32 %v2149_v10 }
 0x787   :  { %2541 = vpow2.f32 %v2147_v11 }
 0x790   :  { %v2536_v8 = vpop.eup %2535 }
 0x791   :  { %929 = vrot.lane.b32.xlu1 %v2536_v8, %s2660_s4 }
 0x792   :  { %v2538_v9 = vpop.eup %2537 }
 0x793   :  { %822 = vrot.lane.b32.xlu0 %v2538_v9, %s2660_s4  ;;  %v2540_v12 = vpop.eup %2539 }
 0x794   :  { %v2542_v13 = vpop.eup %2541  ;;  %v920_v14 = vadd.f32 1.0, %v2540_v12 }
 0x795   :  { %v813_v15 = vadd.f32 1.0, %v2542_v13 }
 0x796   :  { %2543 = vrcp.f32 %v920_v14 }
 0x797   :  { %2545 = vrcp.f32 %v813_v15 }
 0x7a3   :  { %v2544_v17 = vpop.eup %2543 }
 0x7a4   :  { %v2546_v23 = vpop.eup %2545  ;;  %v927_v31 = vmul.f32 %v2544_v17, %v925_v30 }
 0x7a5   :  { %v820_v36 = vmul.f32 %v2546_v23, %v818_v33 }
 0x803   :  { %v930_v21 = vpop.permute.xlu1 %929 }
 0x804   :  { %v932_v22 = vmul.f32 %v2544_v17, %v930_v21 }
 0x805   :  { %v823_v28 = vpop.permute.xlu0 %822 }
 0x806   :  { %934 = vrot.lane.b32.xlu1 %v932_v22, %s2660_s4  ;;  %v825_v29 = vmul.f32 %v2546_v23, %v823_v28 }
 0x808   :  { %827 = vrot.lane.b32.xlu0 %v825_v29, %s2660_s4 }
 0x878   :  { %v935_v34 = vpop.permute.xlu1 %934 }
 0x879   :  { %v2937_v35 = vadd.f32 %v935_v34, %v927_v31 }
 0x87a   :  { %v828_v38 = vpop.permute.xlu0 %827 }
 0x87b   :  { %2547 = vtanh.f32 %v2937_v35  ;;  %v2940_v41 = vadd.f32 %v828_v38, %v820_v36  ;;  %v1136_v8 = vrot.slane %v2937_v35, 2 }
 0x87d   :  { %2549 = vtanh.f32 %v2940_v41  ;;  %v1032_v12 = vrot.slane %v2940_v41, 6 }
 0x888   :  { %v2548_v42 = vpop.eup %2547 }
 0x889   :  { %940 = vrot.lane.b32.xlu1 %v2548_v42, %s2660_s4 }
 0x88a   :  { %v2550_v43 = vpop.eup %2549 }
 0x88b   :  { %833 = vrot.lane.b32.xlu0 %v2550_v43, %s2660_s4 }
 0x8fb   :  { %v941_v44 = vpop.permute.xlu1 %940 }
 0x8fc   :  { %v943_v45 = vmul.f32 %v2544_v17, %v941_v44 }
 0x8fd   :  { %v834_v47 = vpop.permute.xlu0 %833 }
 0x8fe   :  { %v1052_v46 = vrot.slane %v943_v45, 2  ;;  %v836_v48 = vmul.f32 %v2546_v23, %v834_v47 }
 0x900   :  { %1053 = vrot.lane.b32.xlu1 %v1052_v46, %s2661_s7  ;;  %v945_v49 = vrot.slane %v836_v48, 4 }
 0x902   :  { %946 = vrot.lane.b32.xlu0 %v945_v49, %s2661_s7 }
 0x972   :  { %v1054_v50 = vpop.permute.xlu1 %1053 }
 0x973   :  { %2386 = vmatmul.mubr.msk.f32.vlgmr.msra.gmra.mxu1 %vm56_vm0, %v1054_v50 }
 0x974   :  { %2400 = vmatpush3.msra.mxu1 %v2798_v24  ;;  %2407 = vmatprep.mubr.msk.f32.mxu1 %vm2659_vm3, %v2658_v6  ;;  %v947_v51 = vpop.permute.xlu0 %946 }
 0x975   :  { %2401 = vmatprep.subr.mxu1 %v2658_v6  ;;  %2375 = vmatmul.mubr.msk.f32.vlgmr.msra.gmra.mxu0 %vm56_vm0, %v947_v51 }
 0x976   :  { %2402 = vmatpush3.msra.mxu1 %v2804_v25  ;;  %2389 = vmatpush3.msra.mxu0 %v2751_v16 }
 0x977   :  { %2403 = vmatprep.subr.mxu1 %v2658_v6  ;;  %2390 = vmatprep.subr.mxu0 %v2658_v6 }
 0x978   :  { %2404 = vmatpush3.msra.mxu1 %v2813_v26  ;;  %2391 = vmatpush3.msra.mxu0 %v2761_v18 }
 0x979   :  { %2405 = vmatprep.subr.mxu1 %v2658_v6  ;;  %2392 = vmatprep.subr.mxu0 %v2658_v6 }
 0x97a   :  { %2406 = vmatpush3.msra.mxu1 %v2820_v27  ;;  %2393 = vmatpush3.msra.mxu0 %v2768_v19 }
 0x97b   :  { %2396 = vmatprep.mubr.msk.f32.mxu0 %vm2659_vm3, %v2658_v6  ;;  %2394 = vmatprep.subr.mxu0 %v2658_v6 }
 0x97c   :  { %2421 = vmatprep.subr.mxu1 %v2658_v6  ;;  %2395 = vmatpush3.msra.mxu0 %v2775_v20 }
 0x97d   :  { %2410 = vmatprep.subr.mxu0 %v2658_v6 }
 0xa33   :  { %v1123_v52 = vpop.f32.mrf.mxu1 }
 0xa34   :  { %v1127_v53 = vadd.f32 %v1123_v52, %v2849_v40 }
 0xa35   :  { %v2387_v54 = vpop.f32.mrf.mxu1  ;;  %v1016_v55 = vpop.f32.mrf.mxu0 }
 0xa36   :  { %2551 = vtanh.f32 %v1127_v53  ;;  %v1021_v56 = vrot.slane %v1016_v55, 2  ;;  %v2153_v61 = vmul.f32 -1.442695, %v1127_v53 }
 0xa37   :  { %v2376_v57 = vpop.f32.mrf.mxu0 }
 0xa38   :  { %v1023_v58 = vadd.f32 %v1021_v56, %v2847_v39 }
 0xa3a   :  { %2553 = vtanh.f32 %v1023_v58  ;;  %v2151_v62 = vmul.f32 -1.442695, %v1023_v58 }
 0xa3b   :  { %2555 = vpow2.f32 %v2153_v61 }
 0xa3c   :  { %2557 = vpow2.f32 %v2151_v62 }
 0xa43   :  { %v2552_v59 = vpop.eup %2551 }
 0xa44   :  { %1140 = vrot.lane.b32.xlu0 %v2552_v59, %s2660_s4 }
 0xa47   :  { %v2554_v60 = vpop.eup %2553 }
 0xa48   :  { %1036 = vrot.lane.b32.xlu1 %v2554_v60, %s2660_s4  ;;  %v2556_v63 = vpop.eup %2555 }
 0xa49   :  { %v1131_v40 = vadd.f32 1.0, %v2556_v63  ;;  %v2558_v0 = vpop.eup %2557 }
 0xa4a   :  { %v1027_v1 = vadd.f32 1.0, %v2558_v0 }
 0xa4b   :  { %2559 = vrcp.f32 %v1131_v40 }
 0xa4c   :  { %2561 = vrcp.f32 %v1027_v1 }
 0xa58   :  { %v2560_v2 = vpop.eup %2559 }
 0xa59   :  { %v2562_v4 = vpop.eup %2561  ;;  %v1138_v9 = vmul.f32 %v2560_v2, %v1136_v8 }
 0xa5a   :  { %v1034_v13 = vmul.f32 %v2562_v4, %v1032_v12 }
 0xab6   :  { %v1141_v3 = vpop.permute.xlu0 %1140 }
 0xab7   :  { %v1143_v39 = vmul.f32 %v2560_v2, %v1141_v3 }
 0xab9   :  { %1145 = vrot.lane.b32.xlu0 %v1143_v39, %s2660_s4 }
 0xaba   :  { %v1037_v5 = vpop.permute.xlu1 %1036 }
 0xabb   :  { %v1039_v7 = vmul.f32 %v2562_v4, %v1037_v5 }
 0xabd   :  { %1041 = vrot.lane.b32.xlu1 %v1039_v7, %s2660_s4 }
 0xb2b   :  { %v1146_v10 = vpop.permute.xlu0 %1145 }
 0xb2c   :  { %v2976_v11 = vadd.f32 %v1146_v10, %v1138_v9 }
 0xb2e   :  { %2563 = vtanh.f32 %v2976_v11  ;;  %v1346_v58 = vrot.slane %v2976_v11, 2 }
 0xb2f   :  { %v1042_v14 = vpop.permute.xlu1 %1041 }
 0xb30   :  { %v2980_v15 = vadd.f32 %v1042_v14, %v1034_v13 }
 0xb32   :  { %2565 = vtanh.f32 %v2980_v15  ;;  %v1240_v62 = vrot.slane %v2980_v15, 6 }
 0xb3b   :  { %v2564_v17 = vpop.eup %2563 }
 0xb3c   :  { %1151 = vrot.lane.b32.xlu0 %v2564_v17, %s2660_s4 }
 0xb3f   :  { %v2566_v21 = vpop.eup %2565 }
 0xb40   :  { %1047 = vrot.lane.b32.xlu1 %v2566_v21, %s2660_s4 }
 0xbae   :  { %v1152_v22 = vpop.permute.xlu0 %1151 }
 0xbaf   :  { %v1154_v23 = vmul.f32 %v2560_v2, %v1152_v22 }
 0xbb1   :  { %1260 = vrot.lane.b32.xlu0 %v1154_v23, %s2661_s7 }
 0xbb2   :  { %v1048_v28 = vpop.permute.xlu1 %1047 }
 0xbb3   :  { %v1050_v29 = vmul.f32 %v2562_v4, %v1048_v28 }
 0xbb5   :  { %v1156_v30 = vrot.slane %v1050_v29, 6 }
 0xbb7   :  { %1157 = vrot.lane.b32.xlu1 %v1156_v30, %s2661_s7 }
 0xc23   :  { %v1261_v31 = vpop.permute.xlu0 %1260 }
 0xc24   :  { %2408 = vmatmul.mubr.msk.f32.vlgmr.msra.gmra.mxu1 %vm56_vm0, %v1261_v31 }
 0xc25   :  { %2422 = vmatpush3.msra.mxu1 %v2798_v24  ;;  %2429 = vmatprep.mubr.msk.f32.mxu1 %vm2659_vm3, %v2658_v6 }
 0xc26   :  { %2423 = vmatprep.subr.mxu1 %v2658_v6 }
 0xc27   :  { %2424 = vmatpush3.msra.mxu1 %v2804_v25 }
 0xc28   :  { %2425 = vmatprep.subr.mxu1 %v2658_v6 }
 0xc29   :  { %2426 = vmatpush3.msra.mxu1 %v2813_v26  ;;  %v1158_v33 = vpop.permute.xlu1 %1157 }
 0xc2a   :  { %2427 = vmatprep.subr.mxu1 %v2658_v6  ;;  %2397 = vmatmul.mubr.msk.f32.vlgmr.msra.gmra.mxu0 %vm56_vm0, %v1158_v33 }
 0xc2b   :  { %2428 = vmatpush3.msra.mxu1 %v2820_v27  ;;  %2411 = vmatpush3.msra.mxu0 %v2751_v16 }
 0xc2c   :  { %2418 = vmatprep.mubr.msk.f32.mxu0 %vm2659_vm3, %v2658_v6  ;;  %2412 = vmatprep.subr.mxu0 %v2658_v6 }
 0xc2d   :  { %2443 = vmatprep.subr.mxu1 %v2658_v6  ;;  %2413 = vmatpush3.msra.mxu0 %v2761_v18 }
 0xc2e   :  { %2414 = vmatprep.subr.mxu0 %v2658_v6 }
 0xc2f   :  { %2415 = vmatpush3.msra.mxu0 %v2768_v19 }
 0xc30   :  { %2416 = vmatprep.subr.mxu0 %v2658_v6 }
 0xc31   :  { %2417 = vmatpush3.msra.mxu0 %v2775_v20 }
 0xc32   :  { %2432 = vmatprep.subr.mxu0 %v2658_v6 }
 0xce4   :  { %v1330_v34 = vpop.f32.mrf.mxu1 }
 0xce5   :  { %v1335_v35 = vrot.slane %v1330_v34, 2 }
 0xce6   :  { %v2409_v36 = vpop.f32.mrf.mxu1 }
 0xce7   :  { %v1337_v38 = vadd.f32 %v1335_v35, %v2845_v37 }
 0xce9   :  { %2567 = vtanh.f32 %v1337_v38  ;;  %v2157_v46 = vmul.f32 -1.442695, %v1337_v38 }
 0xcea   :  { %v1227_v41 = vpop.f32.mrf.mxu0 }
 0xceb   :  { %v1231_v42 = vadd.f32 %v1227_v41, %v2840_v32 }
 0xcec   :  { %v2398_v43 = vpop.f32.mrf.mxu0 }
 0xced   :  { %2569 = vtanh.f32 %v1231_v42  ;;  %v2155_v47 = vmul.f32 -1.442695, %v1231_v42 }
 0xcee   :  { %2571 = vpow2.f32 %v2157_v46 }
 0xcef   :  { %2573 = vpow2.f32 %v2155_v47 }
 0xcf6   :  { %v2568_v44 = vpop.eup %2567 }
 0xcf7   :  { %1350 = vrot.lane.b32.xlu0 %v2568_v44, %s2660_s4 }
 0xcfa   :  { %v2570_v45 = vpop.eup %2569 }
 0xcfb   :  { %1244 = vrot.lane.b32.xlu1 %v2570_v45, %s2660_s4  ;;  %v2572_v48 = vpop.eup %2571 }
 0xcfc   :  { %v1341_v49 = vadd.f32 1.0, %v2572_v48  ;;  %v2574_v50 = vpop.eup %2573 }
 0xcfd   :  { %v1235_v51 = vadd.f32 1.0, %v2574_v50 }
 0xcfe   :  { %2575 = vrcp.f32 %v1341_v49 }
 0xcff   :  { %2577 = vrcp.f32 %v1235_v51 }
 0xd0b   :  { %v2576_v52 = vpop.eup %2575 }
 0xd0c   :  { %v2578_v55 = vpop.eup %2577  ;;  %v1348_v59 = vmul.f32 %v2576_v52, %v1346_v58 }
 0xd0d   :  { %v1242_v63 = vmul.f32 %v2578_v55, %v1240_v62 }
 0xd69   :  { %v1351_v53 = vpop.permute.xlu0 %1350 }
 0xd6a   :  { %v1353_v54 = vmul.f32 %v2576_v52, %v1351_v53 }
 0xd6c   :  { %1355 = vrot.lane.b32.xlu0 %v1353_v54, %s2660_s4 }
 0xd6d   :  { %v1245_v56 = vpop.permute.xlu1 %1244 }
 0xd6e   :  { %v1247_v57 = vmul.f32 %v2578_v55, %v1245_v56 }
 0xd70   :  { %1249 = vrot.lane.b32.xlu1 %v1247_v57, %s2660_s4 }
 0xdde   :  { %v1356_v60 = vpop.permute.xlu0 %1355 }
 0xddf   :  { %v3016_v61 = vadd.f32 %v1356_v60, %v1348_v59 }
 0xde1   :  { %2579 = vtanh.f32 %v3016_v61  ;;  %v1559_v44 = vrot.slane %v3016_v61, 2 }
 0xde2   :  { %v1250_v40 = vpop.permute.xlu1 %1249 }
 0xde3   :  { %v3020_v0 = vadd.f32 %v1250_v40, %v1242_v63 }
 0xde5   :  { %2581 = vtanh.f32 %v3020_v0  ;;  %v1452_v46 = vrot.slane %v3020_v0, 6 }
 0xdee   :  { %v2580_v1 = vpop.eup %2579 }
 0xdef   :  { %1361 = vrot.lane.b32.xlu0 %v2580_v1, %s2660_s4 }
 0xdf2   :  { %v2582_v2 = vpop.eup %2581 }
 0xdf3   :  { %1255 = vrot.lane.b32.xlu1 %v2582_v2, %s2660_s4 }
 0xe61   :  { %v1362_v3 = vpop.permute.xlu0 %1361 }
 0xe62   :  { %v1364_v39 = vmul.f32 %v2576_v52, %v1362_v3 }
 0xe64   :  { %v1472_v4 = vrot.slane %v1364_v39, 6 }
 0xe65   :  { %v1256_v5 = vpop.permute.xlu1 %1255 }
 0xe66   :  { %1473 = vrot.lane.b32.xlu1 %v1472_v4, %s2661_s7  ;;  %v1258_v7 = vmul.f32 %v2578_v55, %v1256_v5 }
 0xe68   :  { %1366 = vrot.lane.b32.xlu0 %v1258_v7, %s2661_s7 }
 0xed8   :  { %v1474_v8 = vpop.permute.xlu1 %1473 }
 0xed9   :  { %2430 = vmatmul.mubr.msk.f32.vlgmr.msra.gmra.mxu1 %vm56_vm0, %v1474_v8 }
 0xeda   :  { %2444 = vmatpush3.msra.mxu1 %v2798_v24  ;;  %2451 = vmatprep.mubr.msk.f32.mxu1 %vm2659_vm3, %v2658_v6  ;;  %v1367_v9 = vpop.permute.xlu0 %1366 }
 0xedb   :  { %2445 = vmatprep.subr.mxu1 %v2658_v6  ;;  %2419 = vmatmul.mubr.msk.f32.vlgmr.msra.gmra.mxu0 %vm56_vm0, %v1367_v9 }
 0xedc   :  { %2446 = vmatpush3.msra.mxu1 %v2804_v25  ;;  %2433 = vmatpush3.msra.mxu0 %v2751_v16 }
 0xedd   :  { %2447 = vmatprep.subr.mxu1 %v2658_v6  ;;  %2434 = vmatprep.subr.mxu0 %v2658_v6 }
 0xede   :  { %2448 = vmatpush3.msra.mxu1 %v2813_v26  ;;  %2435 = vmatpush3.msra.mxu0 %v2761_v18 }
 0xedf   :  { %2449 = vmatprep.subr.mxu1 %v2658_v6  ;;  %2436 = vmatprep.subr.mxu0 %v2658_v6 }
 0xee0   :  { %2450 = vmatpush3.msra.mxu1 %v2820_v27  ;;  %2437 = vmatpush3.msra.mxu0 %v2768_v19 }
 0xee1   :  { %2440 = vmatprep.mubr.msk.f32.mxu0 %vm2659_vm3, %v2658_v6  ;;  %2438 = vmatprep.subr.mxu0 %v2658_v6 }
 0xee2   :  { %2465 = vmatprep.subr.mxu1 %v2658_v6  ;;  %2439 = vmatpush3.msra.mxu0 %v2775_v20 }
 0xee3   :  { %2454 = vmatprep.subr.mxu0 %v2658_v6 }
 0xf99   :  { %v1543_v10 = vpop.f32.mrf.mxu1 }
 0xf9a   :  { %v1548_v11 = vrot.slane %v1543_v10, 4 }
 0xf9b   :  { %v2431_v12 = vpop.f32.mrf.mxu1  ;;  %v1436_v14 = vpop.f32.mrf.mxu0 }
 0xf9c   :  { %v1550_v13 = vadd.f32 %v1548_v11, %v2845_v37  ;;  %v1441_v15 = vrot.slane %v1436_v14, 6 }
 0xf9d   :  { %v2420_v17 = vpop.f32.mrf.mxu0 }
 0xf9e   :  { %2583 = vtanh.f32 %v1550_v13  ;;  %v1443_v21 = vadd.f32 %v1441_v15, %v2840_v32  ;;  %v2161_v28 = vmul.f32 -1.442695, %v1550_v13 }
 0xfa0   :  { %2585 = vtanh.f32 %v1443_v21  ;;  %v2159_v29 = vmul.f32 -1.442695, %v1443_v21 }
 0xfa1   :  { %2587 = vpow2.f32 %v2161_v28 }
 0xfa2   :  { %2589 = vpow2.f32 %v2159_v29 }
 0xfab   :  { %v2584_v22 = vpop.eup %2583 }
 0xfac   :  { %1563 = vrot.lane.b32.xlu1 %v2584_v22, %s2660_s4 }
 0xfad   :  { %v2586_v23 = vpop.eup %2585 }
 0xfae   :  { %1456 = vrot.lane.b32.xlu0 %v2586_v23, %s2660_s4  ;;  %v2588_v30 = vpop.eup %2587 }
 0xfaf   :  { %v2590_v31 = vpop.eup %2589  ;;  %v1554_v33 = vadd.f32 1.0, %v2588_v30 }
 0xfb0   :  { %v1447_v34 = vadd.f32 1.0, %v2590_v31 }
 0xfb1   :  { %2591 = vrcp.f32 %v1554_v33 }
 0xfb2   :  { %2593 = vrcp.f32 %v1447_v34 }
 0xfbe   :  { %v2592_v35 = vpop.eup %2591 }
 0xfbf   :  { %v2594_v41 = vpop.eup %2593  ;;  %v1561_v45 = vmul.f32 %v2592_v35, %v1559_v44 }
 0xfc0   :  { %v1454_v49 = vmul.f32 %v2594_v41, %v1452_v46 }
0x101e   :  { %v1564_v36 = vpop.permute.xlu1 %1563 }
0x101f   :  { %v1566_v38 = vmul.f32 %v2592_v35, %v1564_v36 }
0x1020   :  { %v1457_v42 = vpop.permute.xlu0 %1456 }
0x1021   :  { %1568 = vrot.lane.b32.xlu1 %v1566_v38, %s2660_s4  ;;  %v1459_v43 = vmul.f32 %v2594_v41, %v1457_v42 }
0x1023   :  { %1461 = vrot.lane.b32.xlu0 %v1459_v43, %s2660_s4 }
0x1093   :  { %v1569_v47 = vpop.permute.xlu1 %1568 }
0x1094   :  { %v3057_v48 = vadd.f32 %v1569_v47, %v1561_v45 }
0x1095   :  { %v1462_v50 = vpop.permute.xlu0 %1461 }
0x1096   :  { %2595 = vtanh.f32 %v3057_v48  ;;  %v3060_v51 = vadd.f32 %v1462_v50, %v1454_v49  ;;  %v1773_v11 = vrot.slane %v3057_v48, 2 }
0x1098   :  { %2597 = vtanh.f32 %v3060_v51  ;;  %v1666_v13 = vrot.slane %v3060_v51, 6 }
0x10a3   :  { %v2596_v52 = vpop.eup %2595 }
0x10a4   :  { %1574 = vrot.lane.b32.xlu1 %v2596_v52, %s2660_s4 }
0x10a5   :  { %v2598_v53 = vpop.eup %2597 }
0x10a6   :  { %1467 = vrot.lane.b32.xlu0 %v2598_v53, %s2660_s4 }
0x1116   :  { %v1575_v54 = vpop.permute.xlu1 %1574 }
0x1117   :  { %v1577_v55 = vmul.f32 %v2592_v35, %v1575_v54 }
0x1118   :  { %v1468_v57 = vpop.permute.xlu0 %1467 }
0x1119   :  { %v1686_v56 = vrot.slane %v1577_v55, 4  ;;  %v1470_v58 = vmul.f32 %v2594_v41, %v1468_v57 }
0x111b   :  { %1687 = vrot.lane.b32.xlu1 %v1686_v56, %s2661_s7  ;;  %v1579_v59 = vrot.slane %v1470_v58, 2 }
0x111d   :  { %1580 = vrot.lane.b32.xlu0 %v1579_v59, %s2661_s7 }
0x118d   :  { %v1688_v60 = vpop.permute.xlu1 %1687 }
0x118e   :  { %2452 = vmatmul.mubr.msk.f32.vlgmr.msra.gmra.mxu1 %vm56_vm0, %v1688_v60 }
0x118f   :  { %2466 = vmatpush3.msra.mxu1 %v2798_v24  ;;  %2473 = vmatprep.mubr.msk.f32.mxu1 %vm2659_vm3, %v2658_v6  ;;  %v1581_v61 = vpop.permute.xlu0 %1580 }
0x1190   :  { %2467 = vmatprep.subr.mxu1 %v2658_v6  ;;  %2441 = vmatmul.mubr.msk.f32.vlgmr.msra.gmra.mxu0 %vm56_vm0, %v1581_v61 }
0x1191   :  { %2468 = vmatpush3.msra.mxu1 %v2804_v25  ;;  %2455 = vmatpush3.msra.mxu0 %v2751_v16 }
0x1192   :  { %2469 = vmatprep.subr.mxu1 %v2658_v6  ;;  %2456 = vmatprep.subr.mxu0 %v2658_v6 }
0x1193   :  { %2470 = vmatpush3.msra.mxu1 %v2813_v26  ;;  %2457 = vmatpush3.msra.mxu0 %v2761_v18 }
0x1194   :  { %2471 = vmatprep.subr.mxu1 %v2658_v6  ;;  %2458 = vmatprep.subr.mxu0 %v2658_v6 }
0x1195   :  { %2472 = vmatpush3.msra.mxu1 %v2820_v27  ;;  %2459 = vmatpush3.msra.mxu0 %v2768_v19 }
0x1196   :  { %2462 = vmatprep.mubr.msk.f32.mxu0 %vm2659_vm3, %v2658_v6  ;;  %2460 = vmatprep.subr.mxu0 %v2658_v6 }
0x1197   :  { %2461 = vmatpush3.msra.mxu0 %v2775_v20 }
0x1198   :  { %2476 = vmatprep.subr.mxu0 %v2658_v6 }
0x124e   :  { %v1757_v16 = vpop.f32.mrf.mxu1 }
0x124f   :  { %v1762_v24 = vrot.slane %v1757_v16, 6 }
0x1250   :  { %v2453_v18 = vpop.f32.mrf.mxu1  ;;  %v1650_v26 = vpop.f32.mrf.mxu0 }
0x1251   :  { %v1764_v25 = vadd.f32 %v1762_v24, %v2845_v37  ;;  %v1655_v62 = vrot.slane %v1650_v26, 4 }
0x1252   :  { %v2442_v27 = vpop.f32.mrf.mxu0 }
0x1253   :  { %2599 = vtanh.f32 %v1764_v25  ;;  %v1657_v19 = vadd.f32 %v1655_v62, %v2840_v32  ;;  %v2165_v20 = vmul.f32 -1.442695, %v1764_v25  ;;  %v2020_v27 = vld [vmem:[%s3162_s8 + $0x38] sm:$0xff] }
0x1255   :  { %2601 = vtanh.f32 %v1657_v19  ;;  %v2163_v0 = vmul.f32 -1.442695, %v1657_v19  ;;  %v2019_v19 = vld [vmem:[%s3162_s8 + $0x30] sm:$0xff] }
0x1256   :  { %2603 = vpow2.f32 %v2165_v20 }
0x1257   :  { %2605 = vpow2.f32 %v2163_v0  ;;  %v2016_v0 = vld [vmem:[%s3162_s8 + $0x18] sm:$0xff] }
0x1260   :  { %v2600_v63 = vpop.eup %2599 }
0x1261   :  { %1777 = vrot.lane.b32.xlu1 %v2600_v63, %s2660_s4  ;;  %v2018_v63 = vld [vmem:[%s3162_s8 + $0x28] sm:$0xff] }
0x1262   :  { %v2602_v40 = vpop.eup %2601 }
0x1263   :  { %1670 = vrot.lane.b32.xlu0 %v2602_v40, %s2660_s4  ;;  %v2604_v1 = vpop.eup %2603  ;;  %v2017_v40 = vld [vmem:[%s3162_s8 + $0x20] sm:$0xff] }
0x1264   :  { %v2606_v2 = vpop.eup %2605  ;;  %v1768_v3 = vadd.f32 1.0, %v2604_v1 }
0x1265   :  { %v1661_v39 = vadd.f32 1.0, %v2606_v2  ;;  %v2015_v2 = vld [vmem:[%s3162_s8 + $0x10] sm:$0xff] }
0x1266   :  { %2607 = vrcp.f32 %v1768_v3  ;;  %v2014_v3 = vld [vmem:[%s3162_s8 + $0x8] sm:$0xff] }
0x1267   :  { %2609 = vrcp.f32 %v1661_v39  ;;  %v2013_v39 = vld [vmem:[%s3162_s8] sm:$0xff]  ;;  %s2663_s8 = smov [#allocation2]  }
0x1268   :  { %s2122_s21 = sshll.u32 %s2663_s8, 4  ;;  %s2123_s21 = int_to_ptr.vmem [resolvable:$true] %s2122_s21 }
0x1269   :  { %p2640_p1 = scmp.lt.s32.totalorder %s2123_s21, %s2123_s21 }
0x1273   :  { %v2608_v4 = vpop.eup %2607 }
0x1274   :  { %v2610_v8 = vpop.eup %2609  ;;  %v1775_v12 = vmul.f32 %v2608_v4, %v1773_v11 }
0x1275   :  { %v1668_v17 = vmul.f32 %v2610_v8, %v1666_v13  ;;  %v2170_v13 = vld [vmem:[%s3163_s9] ss:$0 sm:$0xff]  ;;  %s2635_s9 = scalar_lea.vmem %s2123_s21, 32 }
0x1276   :  { %p2636_p0 = scmp.ne.s32.totalorder %s2123_s21, %s2635_s9  ;;  %p2641_p2 = scmp.lt.s32.totalorder %s2635_s9, %s2635_s9 }
0x1278   :  { %p2642_p3 = por %p2641_p2, %p2640_p1 }
0x127a   :  { %p2643_p4 = pnand %p2642_p3, %p2636_p0 }
0x12d3   :  { %v1778_v5 = vpop.permute.xlu1 %1777 }
0x12d4   :  { %v1780_v7 = vmul.f32 %v2608_v4, %v1778_v5 }
0x12d5   :  { %v1671_v9 = vpop.permute.xlu0 %1670 }
0x12d6   :  { %1782 = vrot.lane.b32.xlu1 %v1780_v7, %s2660_s4  ;;  %v1673_v10 = vmul.f32 %v2610_v8, %v1671_v9 }
0x12d8   :  { %1675 = vrot.lane.b32.xlu0 %v1673_v10, %s2660_s4 }
0x1348   :  { %v1783_v14 = vpop.permute.xlu1 %1782 }
0x1349   :  { %v1785_v15 = vadd.f32 %v1783_v14, %v1775_v12 }
0x134a   :  { %v1676_v21 = vpop.permute.xlu0 %1675 }
0x134b   :  { %2611 = vtanh.f32 %v1785_v15  ;;  %v1678_v22 = vadd.f32 %v1676_v21, %v1668_v17  ;;  %v1984_v60 = vrot.slane %v1785_v15, 2 }
0x134d   :  { %2613 = vtanh.f32 %v1678_v22  ;;  %v1880_v18 = vrot.slane %v1678_v22, 6 }
0x1358   :  { %v2612_v23 = vpop.eup %2611 }
0x1359   :  { %1788 = vrot.lane.b32.xlu1 %v2612_v23, %s2660_s4 }
0x135a   :  { %v2614_v28 = vpop.eup %2613 }
0x135b   :  { %1681 = vrot.lane.b32.xlu0 %v2614_v28, %s2660_s4 }
0x13cb   :  { %v1789_v29 = vpop.permute.xlu1 %1788 }
0x13cc   :  { %v1791_v30 = vmul.f32 %v2608_v4, %v1789_v29 }
0x13cd   :  { %v1682_v33 = vpop.permute.xlu0 %1681 }
0x13ce   :  { %v1900_v31 = vrot.slane %v1791_v30, 2  ;;  %v1684_v34 = vmul.f32 %v2610_v8, %v1682_v33 }
0x13d0   :  { %1901 = vrot.lane.b32.xlu1 %v1900_v31, %s2661_s7  ;;  %v1793_v35 = vrot.slane %v1684_v34, 4 }
0x13d2   :  { %1794 = vrot.lane.b32.xlu0 %v1793_v35, %s2661_s7 }
0x1442   :  { %v1902_v36 = vpop.permute.xlu1 %1901 }
0x1443   :  { %2474 = vmatmul.mubr.msk.f32.vlgmr.msra.gmra.mxu1 %vm56_vm0, %v1902_v36 }
0x1444   :  { %v1795_v38 = vpop.permute.xlu0 %1794 }
0x1445   :  { %2463 = vmatmul.mubr.msk.f32.vlgmr.msra.gmra.mxu0 %vm56_vm0, %v1795_v38 }
0x1446   :  { %2492 = vmatprep.mubr.msk.f32.mxu0 %vm2659_vm3, %v2658_v6  ;;  %2477 = vmatpush3.msra.mxu0 %v2020_v27 }
0x1447   :  { %2478 = vmatprep.subr.mxu0 %v2658_v6 }
0x1448   :  { %2479 = vmatpush3.msra.mxu0 %v2019_v19 }
0x1449   :  { %2480 = vmatprep.subr.mxu0 %v2658_v6 }
0x144a   :  { %2481 = vmatpush3.msra.mxu0 %v2018_v63 }
0x144b   :  { %2482 = vmatprep.subr.mxu0 %v2658_v6 }
0x144c   :  { %2483 = vmatpush3.msra.mxu0 %v2017_v40 }
0x144d   :  { %2484 = vmatprep.subr.mxu0 %v2658_v6 }
0x144e   :  { %2485 = vmatpush3.msra.mxu0 %v2016_v0 }
0x144f   :  { %2486 = vmatprep.subr.mxu0 %v2658_v6 }
0x1450   :  { %2487 = vmatpush3.msra.mxu0 %v2015_v2 }
0x1451   :  { %2488 = vmatprep.subr.mxu0 %v2658_v6 }
0x1452   :  { %2489 = vmatpush3.msra.mxu0 %v2014_v3 }
0x1453   :  { %2490 = vmatprep.subr.mxu0 %v2658_v6 }
0x1454   :  { %2491 = vmatpush3.msra.mxu0 %v2013_v39 }
0x1503   :  { %v1971_v41 = vpop.f32.mrf.mxu1 }
0x1504   :  { %v1975_v42 = vadd.f32 %v1971_v41, %v2845_v37 }
0x1505   :  { %v2475_v43 = vpop.f32.mrf.mxu1  ;;  %v1864_v44 = vpop.f32.mrf.mxu0 }
0x1506   :  { %2615 = vtanh.f32 %v1975_v42  ;;  %v1869_v45 = vrot.slane %v1864_v44, 2  ;;  %v2169_v50 = vmul.f32 -1.442695, %v1975_v42 }
0x1507   :  { %v2464_v46 = vpop.f32.mrf.mxu0 }
0x1508   :  { %v1871_v47 = vadd.f32 %v1869_v45, %v2840_v32 }
0x150a   :  { %2617 = vtanh.f32 %v1871_v47  ;;  %v2167_v51 = vmul.f32 -1.442695, %v1871_v47 }
0x150b   :  { %2619 = vpow2.f32 %v2169_v50 }
0x150c   :  { %2621 = vpow2.f32 %v2167_v51 }
0x1513   :  { %v2616_v48 = vpop.eup %2615 }
0x1514   :  { %1988 = vrot.lane.b32.xlu0 %v2616_v48, %s2660_s4 }
0x1517   :  { %v2618_v49 = vpop.eup %2617 }
0x1518   :  { %1884 = vrot.lane.b32.xlu1 %v2618_v49, %s2660_s4  ;;  %v2620_v52 = vpop.eup %2619 }
0x1519   :  { %v1979_v37 = vadd.f32 1.0, %v2620_v52  ;;  %v2622_v53 = vpop.eup %2621 }
0x151a   :  { %v1875_v54 = vadd.f32 1.0, %v2622_v53 }
0x151b   :  { %2623 = vrcp.f32 %v1979_v37 }
0x151c   :  { %2625 = vrcp.f32 %v1875_v54 }
0x1528   :  { %v2624_v55 = vpop.eup %2623 }
0x1529   :  { %v2626_v57 = vpop.eup %2625  ;;  %v1986_v61 = vmul.f32 %v2624_v55, %v1984_v60 }
0x152a   :  { %v1882_v25 = vmul.f32 %v2626_v57, %v1880_v18 }
0x1586   :  { %v1989_v56 = vpop.permute.xlu0 %1988 }
0x1587   :  { %v1991_v32 = vmul.f32 %v2624_v55, %v1989_v56 }
0x1589   :  { %1993 = vrot.lane.b32.xlu0 %v1991_v32, %s2660_s4 }
0x158a   :  { %v1885_v58 = vpop.permute.xlu1 %1884 }
0x158b   :  { %v1887_v59 = vmul.f32 %v2626_v57, %v1885_v58 }
0x158d   :  { %1889 = vrot.lane.b32.xlu1 %v1887_v59, %s2660_s4 }
0x15fb   :  { %v1994_v16 = vpop.permute.xlu0 %1993 }
0x15fc   :  { %v1996_v24 = vadd.f32 %v1994_v16, %v1986_v61 }
0x15fe   :  { %2627 = vtanh.f32 %v1996_v24 }
0x15ff   :  { %v1890_v26 = vpop.permute.xlu1 %1889 }
0x1600   :  { %v1892_v62 = vadd.f32 %v1890_v26, %v1882_v25 }
0x1602   :  { %2629 = vtanh.f32 %v1892_v62 }
0x160b   :  { %v2628_v20 = vpop.eup %2627 }
0x160c   :  { %1999 = vrot.lane.b32.xlu0 %v2628_v20, %s2660_s4 }
0x160f   :  { %v2630_v1 = vpop.eup %2629 }
0x1610   :  { %1895 = vrot.lane.b32.xlu1 %v2630_v1, %s2660_s4 }
0x167e   :  { %v2000_v4 = vpop.permute.xlu0 %1999 }
0x167f   :  { %v2002_v5 = vmul.f32 %v2624_v55, %v2000_v4 }
0x1681   :  { %v2008_v7 = vrot.slane %v2002_v5, 2 }
0x1682   :  { %v1896_v8 = vpop.permute.xlu1 %1895 }
0x1683   :  { %2009 = vrot.lane.b32.xlu1 %v2008_v7, %s2662_s19  ;;  %v1898_v9 = vmul.f32 %v2626_v57, %v1896_v8 }
0x1685   :  { %2004 = vrot.lane.b32.xlu0 %v1898_v9, %s2661_s7 }
0x16f5   :  { %v2010_v10 = vpop.permute.xlu1 %2009 }
0x16f7   :  { %v2005_v11 = vpop.permute.xlu0 %2004 }
0x16f8   :  { %v2012_v12 = vsel %vm56_vm0, %v2005_v11, %v2010_v10 }
0x16f9   :  { %v2029_v6 = vrot.slane %v2012_v12, 6 }
0x16fb   :  { %2493 = vmatmul.mubr.msk.f32.vlgmr.msra.gmra.mxu0 %vm2030_vm5, %v2029_v6 }
0x17bb   :  { %v2099_v14 = vpop.f32.mrf.mxu0 }
0x17bc   :  { %v2100_v15 = vadd.f32 %v2170_v13, %v2099_v14 }
0x17bd   :  { %v2494_v17 = vpop.f32.mrf.mxu0 }
0x17be   :  { %v2104_v21 = vsel %vm2103_vm6, %v2100_v15, -inf }
0x17bf   :  { %2105 = vmax.xlane.f32.xlu0 %v2104_v21 }
0x1848   :  { %v2106_v22 = vpop.xlane.xlu0 %2105 }
0x1849   :  { %v2107_v23 = vsub.f32 %v2100_v15, %v2106_v22 }
0x184b   :  { %v2108_v28 = vmul.f32 1.442695, %v2107_v23 }
0x184d   :  { %2631 = vpow2.f32 %v2108_v28 }
0x185a   :  { %v2632_v29 = vpop.eup %2631 }
0x185b   :  { %v2110_v30 = vsel %vm2103_vm6, %v2632_v29, 0.0 }
0x185c   :  { %2111 = vadd.xlane.f32.xlu1 %v2110_v30 }
0x18e5   :  { %v2112_v31 = vpop.xlane.xlu1 %2111 }
0x18e6   :  { %2633 = vrcp.f32 %v2112_v31 }
0x18f3   :  { %v2634_v33 = vpop.eup %2633 }
0x18f4   :  { %v2114_v34 = vmul.f32 %v2634_v33, %v2632_v29 }
0x18f6   :  { %2115 = vst.msk [vmem:[#allocation2] sm:$0x3] %vm2103_vm6, %v2114_v34 }
0x18f7   :  { %2646 = shalt.err (!%p2643_p4)
}
0x18f8   :  { %2125 = dma.vmem_to_hbm [thread:$0]  %s2123_s21, 32, %s3164_s10, [#allocation3]  }
0x18f9   :  { %2655 = dma.done.wait [#allocation3], 32  }
0x18fa   :  { %2656 = vsyncadd [#allocation3], 4294967264 }
0x18fb   :  { %2129 = vsyncpa [#allocation3], 1 }

</bundles_post_ra>
